<compile_context>
chip_gen: v7x
topology: tpu7x:2x2x1
jax: 0.10.0
libtpu: 0.0.40
codegen_flags: <defaults>
</compile_context>

<pallas_src>
import functools

import jax
import jax.numpy as jnp
from jax import lax
from jax.experimental import pallas as pl
from jax.experimental.pallas import tpu as pltpu

# Real layer widths of the PyTorch Net and their padded counterparts.
# Layer-1 input keeps its real 784 rows (multiple of 8, full-array block);
# everything downstream is padded to 128-lane multiples.
DIMS     = (784, 392, 196, 98, 49, 10)
PAD_DIMS = (784, 512, 256, 128, 128, 128)
OUT_REAL = 10
NEG_BIG  = -1e30  # plain Python float: no captured jnp constant in the kernel

# Static lane offsets of each bias segment inside the packed bias buffer.
_BIAS_OFFS = []
_o = 0
for _d in PAD_DIMS[1:]:
    _BIAS_OFFS.append(_o)
    _o += _d
_BIAS_TOTAL = _o  # 1152


def _round_up(x, m):
    return (x + m - 1) // m * m


def mlp_kernel(x_ref, b_ref, w1_ref, w2_ref, w3_ref, w4_ref, w5_ref, o_ref):
    """Fused 5x(Linear+ReLU) + masked log_softmax for one batch tile.

    x_ref : (TB, 784)   bf16  activations (batch tile)
    b_ref : (1, 1152)   f32   the five biases concatenated along lanes
    w*_ref: (in_p, out_p) bf16 zero-padded weights (VMEM-resident)
    o_ref : (TB, 128)   f32   padded log-probs (lanes >= 10 are junk)
    """
    h = x_ref[...]  # bf16

    def layer(h_bf16, w_ref, li, *, keep_f32=False):
        out_pad = PAD_DIMS[li + 1]
        off = _BIAS_OFFS[li]
        b = b_ref[:, off:off + out_pad]                       # (1, out_pad) f32
        z = jnp.dot(h_bf16, w_ref[...],                       # bf16 x bf16 on MXU
                    preferred_element_type=jnp.float32) + b   # f32 acc + bias
        a = jnp.maximum(z, 0.0)                               # ReLU (f32 epilogue)
        return a if keep_f32 else a.astype(jnp.bfloat16)

    h = layer(h, w1_ref, 0)
    h = layer(h, w2_ref, 1)
    h = layer(h, w3_ref, 2)
    h = layer(h, w4_ref, 3)
    h = layer(h, w5_ref, 4, keep_f32=True)  # PyTorch module ReLUs l5 too.

    # log_softmax over the 10 real classes: mask padded lanes before reducing
    # so they contribute exp(~-inf) = 0 to the denominator.
    col = lax.broadcasted_iota(jnp.int32, h.shape, 1)
    h = jnp.where(col < OUT_REAL, h, NEG_BIG)
    m = jnp.max(h, axis=1, keepdims=True)
    shifted = h - m
    lse = jnp.log(jnp.sum(jnp.exp(shifted), axis=1, keepdims=True))
    o_ref[...] = (shifted - lse).astype(o_ref.dtype)


def prep_params(params):
    """One-time prep: zero-pad params to 128-lane multiples; weights -> bf16,
    biases packed into a single (1, 1152) f32 buffer.  Call ONCE, outside the
    per-forward path."""
    ws, bs = [], []
    for li, (w, b) in enumerate(params):
        in_d, out_d = DIMS[li], DIMS[li + 1]
        in_p, out_p = PAD_DIMS[li], PAD_DIMS[li + 1]
        wp = jnp.zeros((in_p, out_p), jnp.float32).at[:in_d, :out_d].set(w)
        ws.append(wp.astype(jnp.bfloat16))
        bp = jnp.zeros((1, out_p), jnp.float32).at[:, :out_d].set(b)
        bs.append(bp)
    b_packed = jnp.concatenate(bs, axis=1)  # (1, 1152)
    return tuple(ws), b_packed


@functools.partial(jax.jit, static_argnames=("tile_b",))
def mlp_forward(x, ws, b_packed, *, tile_b=256):
    """x: (B, 784) f32.  ws/b_packed: output of prep_params (bf16 weights,
    packed f32 biases).  Returns (B, 10) f32 log-probs."""
    B = x.shape[0]
    IN = DIMS[0]

    # Batch tile: up to `tile_b` rows (256 fills the v6e/v7x MXU M dim);
    # shrink so the grid keeps >= 2 steps when the batch allows (v7x megacore).
    TB = _round_up(min(tile_b, max(B, 1)), 8)
    if _round_up(B, TB) // TB < 2 and TB >= 16:
        half = _round_up(TB // 2, 8)
        if _round_up(B, half) // half >= 2:
            TB = half
    B_pad = _round_up(B, TB)

    # bf16 stream + batch pad, fused under jit (no eager extra f32 copy).
    x_bf16 = x.astype(jnp.bfloat16)
    if B_pad != B:
        x_bf16 = jnp.pad(x_bf16, ((0, B_pad - B), (0, 0)))

    grid = (B_pad // TB,)
    in_specs = [
        pl.BlockSpec((TB, IN), lambda i: (i, 0)),           # x: tiled over batch
        pl.BlockSpec(b_packed.shape, lambda i: (0, 0)),     # packed biases: resident
    ]
    for w in ws:
        in_specs.append(pl.BlockSpec(w.shape, lambda i: (0, 0)))  # weights: resident

    out_padded = pl.pallas_call(
        mlp_kernel,
        out_shape=jax.ShapeDtypeStruct((B_pad, PAD_DIMS[-1]), jnp.float32),
        grid=grid,
        in_specs=in_specs,
        out_specs=pl.BlockSpec((TB, PAD_DIMS[-1]), lambda i: (i, 0)),
        compiler_params=pltpu.CompilerParams(
            dimension_semantics=("parallel",)),
    )(x_bf16, b_packed, *ws)

    return out_padded[:B, :OUT_REAL]


def init_params(key):
    """Deterministic synthetic parameters matching the module's layer shapes
    (weights stored as (in, out), i.e. transposed vs torch.nn.Linear)."""
    params = []
    for i in range(len(DIMS) - 1):
        fan_in, fan_out = DIMS[i], DIMS[i + 1]
        key, kw, kb = jax.random.split(key, 3)
        bound = 1.0 / jnp.sqrt(fan_in)
        w = jax.random.uniform(kw, (fan_in, fan_out), jnp.float32, -bound, bound)
        b = jax.random.uniform(kb, (1, fan_out), jnp.float32, -bound, bound)
        params.append((w, b))
    return params


def reference_forward(x, params):
    """Pure-JAX reference mirroring the kernel's numerics:
    bf16-rounded matmul inputs, f32 accumulation, f32 bias/ReLU/log_softmax."""
    h = x
    for w, b in params:
        wq = w.astype(jnp.bfloat16).astype(jnp.float32)
        hq = h.astype(jnp.bfloat16).astype(jnp.float32)
        h = jnp.maximum(hq @ wq + b, 0.0)
    return jax.nn.log_softmax(h, axis=1)


if __name__ == "__main__":
    key = jax.random.PRNGKey(0)
    key, kx = jax.random.split(key)
    B = 16
    x = jax.random.normal(kx, (B, 784), jnp.float32)
    params = init_params(key)

    # One-time parameter prep (padding / bf16 cast / bias packing) hoisted
    # out of the per-call path.
    ws, b_packed = prep_params(params)
    ws = jax.block_until_ready(ws)

    # tile_b=8 keeps the demo tiny while still exercising a 2-step batch grid
    # with VMEM-resident weights and pipelined bf16 activation tiles.
    out = mlp_forward(x, ws, b_packed, tile_b=8)
    out = jax.block_until_ready(out)

    ref = reference_forward(x, params)
    assert out.shape == (B, OUT_REAL), out.shape
    err = jnp.max(jnp.abs(out - ref))
    assert jnp.allclose(out, ref, atol=2e-3, rtol=2e-3), f"max err {err}"
    print("KERNEL_OK")
</pallas_src>

<mosaic_0001>
module attributes {stable_mosaic.version = 11 : i64} {
  func.func @mlp_kernel(%arg0: i32, %arg1: memref<8x784xbf16, #tpu.memory_space<vmem>>, %arg2: memref<1x1152xf32, #tpu.memory_space<vmem>>, %arg3: memref<784x512xbf16, #tpu.memory_space<vmem>>, %arg4: memref<512x256xbf16, #tpu.memory_space<vmem>>, %arg5: memref<256x128xbf16, #tpu.memory_space<vmem>>, %arg6: memref<128x128xbf16, #tpu.memory_space<vmem>>, %arg7: memref<128x128xbf16, #tpu.memory_space<vmem>>, %arg8: memref<8x128xf32, #tpu.memory_space<vmem>>) attributes {dimension_semantics = [#tpu.dimension_semantics<parallel>], iteration_bounds = array<i64: 2>, scalar_prefetch = 0 : i64, scratch_operands = 0 : i64, tpu.core_type = #tpu.core_type<tc>, window_params = [{transform_indices = @transform_0, window_bounds = array<i64: 8, 784>}, {pipeline_mode = #tpu.pipeline_mode<synchronous>, transform_indices = @transform_1, window_bounds = array<i64: 1, 1152>}, {pipeline_mode = #tpu.pipeline_mode<synchronous>, transform_indices = @transform_2, window_bounds = array<i64: 784, 512>}, {pipeline_mode = #tpu.pipeline_mode<synchronous>, transform_indices = @transform_3, window_bounds = array<i64: 512, 256>}, {pipeline_mode = #tpu.pipeline_mode<synchronous>, transform_indices = @transform_4, window_bounds = array<i64: 256, 128>}, {pipeline_mode = #tpu.pipeline_mode<synchronous>, transform_indices = @transform_5, window_bounds = array<i64: 128, 128>}, {pipeline_mode = #tpu.pipeline_mode<synchronous>, transform_indices = @transform_6, window_bounds = array<i64: 128, 128>}, {transform_indices = @transform_7, window_bounds = array<i64: 8, 128>}]} {
    %c0 = arith.constant 0 : index
    %c0_0 = arith.constant 0 : index
    %0 = vector.load %arg1[%c0, %c0_0] : memref<8x784xbf16, #tpu.memory_space<vmem>>, vector<8x784xbf16>
    %c0_1 = arith.constant 0 : index
    %c0_2 = arith.constant 0 : index
    %1 = vector.load %arg2[%c0_1, %c0_2] : memref<1x1152xf32, #tpu.memory_space<vmem>>, vector<1x512xf32>
    %c0_3 = arith.constant 0 : index
    %c0_4 = arith.constant 0 : index
    %2 = vector.load %arg3[%c0_3, %c0_4] : memref<784x512xbf16, #tpu.memory_space<vmem>>, vector<784x512xbf16>
    %cst = arith.constant dense<0.000000e+00> : vector<8x512xf32>
    %3 = tpu.matmul %0, %2, %cst {dimension_numbers = #tpu.dot_dimension_numbers<[1], [0], [0], [1], [0, 0, 1, 1], [], []>} : vector<8x784xbf16>, vector<784x512xbf16>, vector<8x512xf32> -> vector<8x512xf32>
    %4 = vector.broadcast %1 : vector<1x512xf32> to vector<8x512xf32>
    %5 = arith.addf %3, %4 : vector<8x512xf32>
    %cst_5 = arith.constant 0.000000e+00 : f32
    %6 = vector.broadcast %cst_5 : f32 to vector<8x512xf32>
    %7 = arith.maximumf %5, %6 : vector<8x512xf32>
    %8 = arith.truncf %7 : vector<8x512xf32> to vector<8x512xbf16>
    %c0_6 = arith.constant 0 : index
    %c512 = arith.constant 512 : index
    %9 = vector.load %arg2[%c0_6, %c512] : memref<1x1152xf32, #tpu.memory_space<vmem>>, vector<1x256xf32>
    %c0_7 = arith.constant 0 : index
    %c0_8 = arith.constant 0 : index
    %10 = vector.load %arg4[%c0_7, %c0_8] : memref<512x256xbf16, #tpu.memory_space<vmem>>, vector<512x256xbf16>
    %cst_9 = arith.constant dense<0.000000e+00> : vector<8x256xf32>
    %11 = tpu.matmul %8, %10, %cst_9 {dimension_numbers = #tpu.dot_dimension_numbers<[1], [0], [0], [1], [0, 0, 1, 1], [], []>} : vector<8x512xbf16>, vector<512x256xbf16>, vector<8x256xf32> -> vector<8x256xf32>
    %12 = vector.broadcast %9 : vector<1x256xf32> to vector<8x256xf32>
    %13 = arith.addf %11, %12 : vector<8x256xf32>
    %cst_10 = arith.constant 0.000000e+00 : f32
    %14 = vector.broadcast %cst_10 : f32 to vector<8x256xf32>
    %15 = arith.maximumf %13, %14 : vector<8x256xf32>
    %16 = arith.truncf %15 : vector<8x256xf32> to vector<8x256xbf16>
    %c0_11 = arith.constant 0 : index
    %c768 = arith.constant 768 : index
    %17 = vector.load %arg2[%c0_11, %c768] : memref<1x1152xf32, #tpu.memory_space<vmem>>, vector<1x128xf32>
    %c0_12 = arith.constant 0 : index
    %c0_13 = arith.constant 0 : index
    %18 = vector.load %arg5[%c0_12, %c0_13] : memref<256x128xbf16, #tpu.memory_space<vmem>>, vector<256x128xbf16>
    %cst_14 = arith.constant dense<0.000000e+00> : vector<8x128xf32>
    %19 = tpu.matmul %16, %18, %cst_14 {dimension_numbers = #tpu.dot_dimension_numbers<[1], [0], [0], [1], [0, 0, 1, 1], [], []>} : vector<8x256xbf16>, vector<256x128xbf16>, vector<8x128xf32> -> vector<8x128xf32>
    %20 = vector.broadcast %17 : vector<1x128xf32> to vector<8x128xf32>
    %21 = arith.addf %19, %20 : vector<8x128xf32>
    %cst_15 = arith.constant 0.000000e+00 : f32
    %22 = vector.broadcast %cst_15 : f32 to vector<8x128xf32>
    %23 = arith.maximumf %21, %22 : vector<8x128xf32>
    %24 = arith.truncf %23 : vector<8x128xf32> to vector<8x128xbf16>
    %c0_16 = arith.constant 0 : index
    %c896 = arith.constant 896 : index
    %25 = vector.load %arg2[%c0_16, %c896] : memref<1x1152xf32, #tpu.memory_space<vmem>>, vector<1x128xf32>
    %c0_17 = arith.constant 0 : index
    %c0_18 = arith.constant 0 : index
    %26 = vector.load %arg6[%c0_17, %c0_18] : memref<128x128xbf16, #tpu.memory_space<vmem>>, vector<128x128xbf16>
    %cst_19 = arith.constant dense<0.000000e+00> : vector<8x128xf32>
    %27 = tpu.matmul %24, %26, %cst_19 {dimension_numbers = #tpu.dot_dimension_numbers<[1], [0], [0], [1], [0, 0, 1, 1], [], []>} : vector<8x128xbf16>, vector<128x128xbf16>, vector<8x128xf32> -> vector<8x128xf32>
    %28 = vector.broadcast %25 : vector<1x128xf32> to vector<8x128xf32>
    %29 = arith.addf %27, %28 : vector<8x128xf32>
    %cst_20 = arith.constant 0.000000e+00 : f32
    %30 = vector.broadcast %cst_20 : f32 to vector<8x128xf32>
    %31 = arith.maximumf %29, %30 : vector<8x128xf32>
    %32 = arith.truncf %31 : vector<8x128xf32> to vector<8x128xbf16>
    %c0_21 = arith.constant 0 : index
    %c1024 = arith.constant 1024 : index
    %33 = vector.load %arg2[%c0_21, %c1024] : memref<1x1152xf32, #tpu.memory_space<vmem>>, vector<1x128xf32>
    %c0_22 = arith.constant 0 : index
    %c0_23 = arith.constant 0 : index
    %34 = vector.load %arg7[%c0_22, %c0_23] : memref<128x128xbf16, #tpu.memory_space<vmem>>, vector<128x128xbf16>
    %cst_24 = arith.constant dense<0.000000e+00> : vector<8x128xf32>
    %35 = tpu.matmul %32, %34, %cst_24 {dimension_numbers = #tpu.dot_dimension_numbers<[1], [0], [0], [1], [0, 0, 1, 1], [], []>} : vector<8x128xbf16>, vector<128x128xbf16>, vector<8x128xf32> -> vector<8x128xf32>
    %36 = vector.broadcast %33 : vector<1x128xf32> to vector<8x128xf32>
    %37 = arith.addf %35, %36 : vector<8x128xf32>
    %cst_25 = arith.constant 0.000000e+00 : f32
    %38 = vector.broadcast %cst_25 : f32 to vector<8x128xf32>
    %39 = arith.maximumf %37, %38 : vector<8x128xf32>
    %40 = tpu.iota {dimensions = array<i32: 1>} : vector<8x128xi32>
    %c10_i32 = arith.constant 10 : i32
    %41 = vector.broadcast %c10_i32 : i32 to vector<8x128xi32>
    %42 = arith.cmpi slt, %40, %41 : vector<8x128xi32>
    %cst_26 = arith.constant -1.000000e+30 : f32
    %43 = vector.broadcast %cst_26 : f32 to vector<8x128xf32>
    %44 = arith.select %42, %39, %43 : vector<8x128xi1>, vector<8x128xf32>
    %cst_27 = arith.constant dense<0xFF800000> : vector<8xf32>
    %45 = vector.multi_reduction <maximumf>, %44, %cst_27 [1] : vector<8x128xf32> to vector<8xf32>
    %46 = vector.shape_cast %45 : vector<8xf32> to vector<8x1xf32>
    %47 = vector.broadcast %46 : vector<8x1xf32> to vector<8x128xf32>
    %48 = arith.subf %44, %47 : vector<8x128xf32>
    %49 = math.exp %48 : vector<8x128xf32>
    %cst_28 = arith.constant dense<0.000000e+00> : vector<8xf32>
    %50 = vector.multi_reduction <add>, %49, %cst_28 [1] : vector<8x128xf32> to vector<8xf32>
    %51 = vector.shape_cast %50 : vector<8xf32> to vector<8x1xf32>
    %52 = math.log %51 : vector<8x1xf32>
    %53 = vector.broadcast %52 : vector<8x1xf32> to vector<8x128xf32>
    %54 = arith.subf %48, %53 : vector<8x128xf32>
    %c0_29 = arith.constant 0 : index
    %c0_30 = arith.constant 0 : index
    %55 = vector.load %arg8[%c0_29, %c0_30] : memref<8x128xf32, #tpu.memory_space<vmem>>, vector<8x128xf32>
    tpu.vector_store %arg8[%c0_29, %c0_30], %54 {strides = array<i32>} : memref<8x128xf32, #tpu.memory_space<vmem>>, vector<8x128xf32>,
    return
  }
  func.func @transform_0(%arg0: i32) -> (i32, i32) {
    %c0_i32 = arith.constant 0 : i32
    %c0_i32_0 = arith.constant 0 : i32
    return %arg0, %c0_i32 : i32, i32
  }
  func.func @transform_1(%arg0: i32) -> (i32, i32) {
    %c0_i32 = arith.constant 0 : i32
    %c0_i32_0 = arith.constant 0 : i32
    %c0_i32_1 = arith.constant 0 : i32
    return %c0_i32, %c0_i32_0 : i32, i32
  }
  func.func @transform_2(%arg0: i32) -> (i32, i32) {
    %c0_i32 = arith.constant 0 : i32
    %c0_i32_0 = arith.constant 0 : i32
    %c0_i32_1 = arith.constant 0 : i32
    return %c0_i32, %c0_i32_0 : i32, i32
  }
  func.func @transform_3(%arg0: i32) -> (i32, i32) {
    %c0_i32 = arith.constant 0 : i32
    %c0_i32_0 = arith.constant 0 : i32
    %c0_i32_1 = arith.constant 0 : i32
    return %c0_i32, %c0_i32_0 : i32, i32
  }
  func.func @transform_4(%arg0: i32) -> (i32, i32) {
    %c0_i32 = arith.constant 0 : i32
    %c0_i32_0 = arith.constant 0 : i32
    %c0_i32_1 = arith.constant 0 : i32
    return %c0_i32, %c0_i32_0 : i32, i32
  }
  func.func @transform_5(%arg0: i32) -> (i32, i32) {
    %c0_i32 = arith.constant 0 : i32
    %c0_i32_0 = arith.constant 0 : i32
    %c0_i32_1 = arith.constant 0 : i32
    return %c0_i32, %c0_i32_0 : i32, i32
  }
  func.func @transform_6(%arg0: i32) -> (i32, i32) {
    %c0_i32 = arith.constant 0 : i32
    %c0_i32_0 = arith.constant 0 : i32
    %c0_i32_1 = arith.constant 0 : i32
    return %c0_i32, %c0_i32_0 : i32, i32
  }
  func.func @transform_7(%arg0: i32) -> (i32, i32) {
    %c0_i32 = arith.constant 0 : i32
    %c0_i32_0 = arith.constant 0 : i32
    return %arg0, %c0_i32 : i32, i32
  }
}

</mosaic_0001>

<bundles_post_ra>
// kernel: mlp_forward.1
= control target key start
LH: loop header
LB: loop body
LE: loop exit
PB: predicated region body
PF: predicated region fallthrough
CT: control target
= control target key end

     0   :  { %s4460_s0 = inlined_call_operand.vmem [shape: bf16[16,784], index: 0, kind: input, shape index: {}]   ;;  %s4461_s1 = inlined_call_operand.vmem [shape: f32[1,1152], index: 1, kind: input, shape index: {}]   ;;  %s4462_s2 = inlined_call_operand.hbm [shape: bf16[784,512], index: 2, kind: input, shape index: {}]   ;;  %s4463_s3 = inlined_call_operand.hbm [shape: bf16[512,256], index: 3, kind: input, shape index: {}]   ;;  %s4464_s4 = inlined_call_operand.vmem [shape: bf16[256,128], index: 4, kind: input, shape index: {}]   ;;  %s4465_s5 = inlined_call_operand.hbm [shape: bf16[128,128], index: 5, kind: input, shape index: {}]   ;;  %s4466_s6 = inlined_call_operand.hbm [shape: bf16[128,128], index: 6, kind: input, shape index: {}]   ;;  %s4467_s7 = inlined_call_operand.hbm [shape: f32[16,128], index: 7, kind: output, shape index: {}]  }
   0x1   :  { %4472 = sst [smem:[#allocation17_spill]] %s4463_s3 }
   0x2   :  { %12 = vsyncpa [#allocation3], 0 }
   0x3   :  { %13 = vsyncpa [#allocation6], 0 }
   0x4   :  { %14 = vsyncpa [#allocation9], 0 }
   0x5   :  { %15 = vsyncpa [#allocation4], 0 }
   0x6   :  { %17 = vsyncpa [#allocation4 + $0x1], 0  ;;  %s4116_s24 = smov 0   ;;  %s4118_s25 = smov 0  }
   0x7   :  { %s4120_s26 = smov 0   ;;  %s4122_s27 = smov 0  }
   0x8 LB: > { %4473 = sst [smem:[#allocation15_spill]] %s4056_s26  ;;  %s4137_s28 = sadd.s32 4294967295, %s4060_s27   ;;  %s4060_s27 = sphi %s4122_s27, %s4494_s27   ;;  %s4056_s26 = sphi %s4120_s26, %s4491_s26   ;;  %s4052_s25 = sphi %s4118_s25, %s4493_s25   ;;  %s4048_s24 = sphi %s4116_s24, %s4492_s24  }
   0x9   : > { %s2916_s29 = sadd.s32 4294967294, %s4060_s27   ;;  %s4141_s30 = sadd.s32 1, %s4060_s27  }
   0xa   : > { %s182_s8 = sadd.s32 1, %s4056_s26  ;;  %s179_s9 = ssub.s32 %s4060_s27, %s4141_s30 }
   0xb   : > { %p192_p0 = scmp.ne.s32.totalorder %s4056_s26, %s4052_s25  ;;  %p180_p1 = scmp.eq.s32.totalorder %s179_s9, 0 }
   0xc   : > { %p193_p2 = scmp.eq.s32.totalorder %s4137_s28, 1  ;;  %p198_p3 = scmp.ne.s32.totalorder %s4052_s25, %s4048_s24 }
   0xd   : > { %p199_p4 = scmp.eq.s32.totalorder %s2916_s29, 1  ;;  %p2917_p7 = scmp.ge.s32.totalorder %s4060_s27, 1 }
   0xe   : > { %s4152_s10 = scalar_select %p180_p1, %s4056_s26, %s182_s8  }
   0xf   : > { %p4154_p5 = por %p193_p2, %p192_p0  ;;  %p4158_p6 = por %p199_p4, %p198_p3 }
  0x10   : > { %4474 = sst [smem:[#allocation16_spill]] %s4152_s10  ;;  %p206_p8 = scmp.lt.s32.totalorder %s4060_s27, 3 }
  0x11   : > { %s4475_s11 = scalar_select %p4154_p5, 1, 0 }
  0x12   : > { %s4476_s12 = scalar_select %p4158_p6, 1, 0 }
  0x13   : > { %p4468_p9 = scmp.eq.s32.totalorder %s4137_s28, 0  ;;  %p4165_p10 = pnand %p2917_p7, %p206_p8 }
  0x14   : > { %s4062_s14 = smov [#allocation5]   ;;  %s4063_s17 = smov [#allocation2]  }
  0x15   : > { %s4477_s13 = scalar_select %p4165_p10, 1, 0 }
  0x16   : > { %s234_s15 = sshll.u32 %s4062_s14, 4  ;;  %p3369_p11 = pneg %p4165_p10  ;;  %s235_s15 = int_to_ptr.vmem [resolvable:$true] %s234_s15 }
  0x17   : > { %s221_s18 = sshll.u32 %s4063_s17, 4  ;;  %s4479_s3 = sld [smem:[#allocation17_spill]]  ;;  %s4177_s18 = int_to_ptr.vmem [resolvable:$true] %s221_s18 }
  0x18   : > { %p4173_p12 = pnand %p4468_p9, %p3369_p11 }
  0x1a   : > { %p4187_p0 = pneg %p4173_p12 }
  0x1d   : > { %s3874_s21 = scalar_lea.hbm %s4479_s3, 8192 }
  0x1e   : > { %p3875_p13 = scmp.ne.s32.totalorder %s4479_s3, %s3874_s21  ;;  %p3881_p3 = scmp.lt.u32.totalorder %s3874_s21, %s4479_s3 }
  0x20   : > { %p3877_p1 = pnand %p4187_p0, %p3875_p13 }
  0x22   : > { %p3878_p2 = pneg %p3877_p1 }
  0x24   : > { %p3883_p4 = pnand %p3881_p3, %p3878_p2 }
  0x26   : > { %3886 = shalt.err (!%p3883_p4)
}
  0x27   : > { %s3887_s14 = scalar_lea.vmem %s235_s15, 8192  ;;  %p3895_p9 = scmp.lt.s32.totalorder %s235_s15, %s235_s15 }
  0x28   : > { %p3888_p7 = scmp.ne.s32.totalorder %s235_s15, %s3887_s14  ;;  %p3896_p6 = scmp.lt.s32.totalorder %s3887_s14, %s3887_s14 }
  0x2a   : > { %p3890_p8 = pnand %p3888_p7, %p4187_p0  ;;  %p3897_p5 = por %p3896_p6, %p3895_p9 }
  0x2c   : > { %p3891_p11 = pneg %p3890_p8 }
  0x2e   : > { %p3898_p10 = pnand %p3897_p5, %p3891_p11 }
  0x30   : > { %3901 = shalt.err (!%p3898_p10)
}
  0x31   : > { %s4064_s17 = smov 128   ;;  %s4065_s19 = smov 8  }
  0x32   : > { %3375 = dma.hbm_to_vmem [thread:$0]  (!%p4173_p12), %s4479_s3, 8192, %s235_s15, [#allocation6], %s4064_s17, %s4064_s17, %s4065_s19  }
  0x33   : > { %s3902_s8 = scalar_lea.hbm %s4462_s2, 25088 }
  0x34   : > { %p3903_p13 = scmp.ne.s32.totalorder %s4462_s2, %s3902_s8  ;;  %p3909_p9 = scmp.lt.u32.totalorder %s3902_s8, %s4462_s2 }
  0x36   : > { %p3905_p5 = pnand %p3903_p13, %p4187_p0 }
  0x38   : > { %p3906_p6 = pneg %p3905_p5 }
  0x3a   : > { %p3911_p10 = pnand %p3909_p9, %p3906_p6 }
  0x3c   : > { %3914 = shalt.err (!%p3911_p10)
}
  0x3d   : > { %s3915_s15 = scalar_lea.vmem %s4177_s18, 25088  ;;  %p3923_p4 = scmp.lt.s32.totalorder %s4177_s18, %s4177_s18 }
  0x3e   : > { %p3916_p1 = scmp.ne.s32.totalorder %s4177_s18, %s3915_s15  ;;  %p3924_p7 = scmp.lt.s32.totalorder %s3915_s15, %s3915_s15 }
  0x40   : > { %p3918_p2 = pnand %p3916_p1, %p4187_p0  ;;  %p3925_p8 = por %p3924_p7, %p3923_p4 }
  0x42   : > { %p3919_p3 = pneg %p3918_p2 }
  0x44   : > { %p3926_p11 = pnand %p3925_p8, %p3919_p3 }
  0x46   : > { %3929 = shalt.err (!%p3926_p11)
}
  0x47   : > { %s4066_s10 = smov 256   ;;  %s4067_s26 = smov 16  }
  0x48   : > { %3372 = dma.hbm_to_vmem [thread:$0]  (!%p4173_p12), %s4462_s2, 25088, %s4177_s18, [#allocation3], %s4066_s10, %s4066_s10, %s4067_s26  }
  0x49   : > { %s4068_s20 = smov [#allocation7]   ;;  %s3930_s8 = scalar_lea.hbm %s4465_s5, 1024 }
  0x4a   : > { %s250_s21 = sshll.u32 %s4068_s20, 4  ;;  %p3931_p13 = scmp.ne.s32.totalorder %s4465_s5, %s3930_s8  ;;  %s251_s21 = int_to_ptr.vmem [resolvable:$true] %s250_s21 }
  0x4b   : > { %p3937_p9 = scmp.lt.u32.totalorder %s3930_s8, %s4465_s5 }
  0x4c   : > { %p3933_p5 = pnand %p3931_p13, %p4187_p0 }
  0x4e   : > { %p3934_p6 = pneg %p3933_p5 }
  0x50   : > { %p3939_p10 = pnand %p3937_p9, %p3934_p6 }
  0x52   : > { %3942 = shalt.err (!%p3939_p10)
}
  0x53   : > { %s3943_s18 = scalar_lea.vmem %s251_s21, 1024  ;;  %p3951_p4 = scmp.lt.s32.totalorder %s251_s21, %s251_s21 }
  0x54   : > { %p3944_p1 = scmp.ne.s32.totalorder %s251_s21, %s3943_s18  ;;  %p3952_p7 = scmp.lt.s32.totalorder %s3943_s18, %s3943_s18 }
  0x56   : > { %p3946_p2 = pnand %p3944_p1, %p4187_p0  ;;  %p3953_p8 = por %p3952_p7, %p3951_p4 }
  0x58   : > { %p3947_p3 = pneg %p3946_p2 }
  0x5a   : > { %p3954_p11 = pnand %p3953_p8, %p3947_p3 }
  0x5c   : > { %3957 = shalt.err (!%p3954_p11)
}
  0x5d   : > { %s4069_s10 = smov 64   ;;  %s4070_s26 = smov 4  }
  0x5e   : > { %3378 = dma.hbm_to_vmem [thread:$0]  (!%p4173_p12), %s4465_s5, 1024, %s251_s21, [#allocation6], %s4069_s10, %s4069_s10, %s4070_s26  }
  0x5f   : > { %s4071_s19 = smov [#allocation8]   ;;  %s3958_s8 = scalar_lea.hbm %s4466_s6, 1024 }
  0x60   : > { %s263_s20 = sshll.u32 %s4071_s19, 4  ;;  %p3959_p13 = scmp.ne.s32.totalorder %s4466_s6, %s3958_s8  ;;  %s264_s20 = int_to_ptr.vmem [resolvable:$true] %s263_s20 }
  0x61   : > { %p3965_p9 = scmp.lt.u32.totalorder %s3958_s8, %s4466_s6 }
  0x62   : > { %p3961_p5 = pnand %p3959_p13, %p4187_p0 }
  0x64   : > { %p3962_p6 = pneg %p3961_p5 }
  0x66   : > { %p3967_p10 = pnand %p3965_p9, %p3962_p6 }
  0x68   : > { %3970 = shalt.err (!%p3967_p10)
}
  0x69   : > { %s3971_s21 = scalar_lea.vmem %s264_s20, 1024  ;;  %p3979_p4 = scmp.lt.s32.totalorder %s264_s20, %s264_s20 }
  0x6a   : > { %p3972_p1 = scmp.ne.s32.totalorder %s264_s20, %s3971_s21  ;;  %p3980_p7 = scmp.lt.s32.totalorder %s3971_s21, %s3971_s21 }
  0x6c   : > { %p3974_p2 = pnand %p3972_p1, %p4187_p0  ;;  %p3981_p8 = por %p3980_p7, %p3979_p4 }
  0x6e   : > { %p3975_p3 = pneg %p3974_p2 }
  0x70   : > { %p3982_p11 = pnand %p3981_p8, %p3975_p3 }
  0x72   : > { %3985 = shalt.err (!%p3982_p11)
}
  0x73   : > { %3381 = dma.hbm_to_vmem [thread:$0]  (!%p4173_p12), %s4466_s6, 1024, %s264_s20, [#allocation9], %s4069_s10, %s4069_s10, %s4070_s26  }
  0x74   : > { %p4481_p13 = scmp.ne.s32.totalorder %s4477_s13, 0 }
  0x75   : > { %p4482_p5 = scmp.eq.s32.totalorder (!%p4481_p13), %s4137_s28, 0 }
  0x76   : > { %287 = sbr.rel (%p4481_p13) target bundleno = 1816 (0x718), region = 48 }
  0x7d   : > { %4031 = dma.done.wait (%p4482_p5), [#allocation3], 25088   ;;  %p4483_p0 = pmov %p4482_p5 }
  0x7f   : > { %4033 = vsyncadd (%p4483_p0), [#allocation3], 4294942208  ;;  %p4484_p6 = pmov %p4483_p0 }
  0x80   : > { %p4485_p9 = pmov %p4483_p0 }
  0x81   : > { %4035 = dma.done.wait (%p4484_p6), [#allocation6], 9216  }
  0x82   : > { %4037 = vsyncadd (%p4485_p9), [#allocation6], 4294958080  ;;  %p4486_p10 = pmov %p4483_p0 }
  0x83   : > { %p4487_p12 = pmov %p4483_p0 }
  0x84   : > { %4039 = dma.done.wait (%p4486_p10), [#allocation9], 1024  }
  0x85   : > { %4041 = vsyncadd (%p4487_p12), [#allocation9], 4294966272  ;;  %p331_p1 = scmp.lt.s32.totalorder %s4137_s28, 1  ;;  %v4072_v0 = vmov 0   ;;  %v3440_v1 = vld [vmem:[#allocation2 + $0x4] ss:$16 sps:$4 sm:$0xff]  }
  0x86   : > { %1722 = vmatprep.mubr.bf16.mxu1 %v4072_v0  ;;  %v3442_v2 = vld [vmem:[#allocation2 + $0x604] ss:$16 sps:$4 sm:$0xff]   ;;  %1567 = vmatprep.subr.bf16.mxu0 %v3440_v1  ;;  %v3444_v3 = vld [vmem:[#allocation2] ss:$16 sps:$4 sm:$0xff]   ;;  %v3448_v6 = vld [vmem:[#allocation2 + $0x8] ss:$16 sps:$4 sm:$0xff]  }
  0x87   : > { %s332_s13 = scalar_select %p331_p1, %s4137_s28, 1  ;;  %v3445_v4 = vld [vmem:[#allocation2 + $0x600] ss:$16 sps:$4 sm:$0xff]   ;;  %1690 = vmatprep.subr.bf16.mxu1 %v3442_v2  ;;  %v3446_v5 = vld [vmem:[#allocation2 + $0x24] ss:$16 sps:$4 sm:$0xff]   ;;  %1568 = vmatpush1.bf16.msra.mxu0 %v3444_v3  ;;  %vm1563_vm0 = vcmask 130048  }
  0x88   : > { %1691 = vmatpush1.bf16.msra.mxu1 %v3445_v4  ;;  %v3450_v7 = vld [vmem:[#allocation2 + $0xc] ss:$16 sps:$4 sm:$0xff]   ;;  %1569 = vmatprep.subr.bf16.mxu0 %v3446_v5  ;;  %v3451_v8 = vld [vmem:[#allocation2 + $0x20] ss:$16 sps:$4 sm:$0xff]   ;;  %v3453_v10 = vld [vmem:[#allocation2 + $0x44] ss:$16 sps:$4 sm:$0xff]  }
  0x89   : > { %s3350_s16 = smul.u32 28, %s332_s13  ;;  %1731 = vmatprep.subr.bf16.mxu1 %v3450_v7  ;;  %v3455_v11 = vld [vmem:[#allocation2 + $0x28] ss:$16 sps:$4 sm:$0xff]   ;;  %v3457_v12 = vld [vmem:[#allocation2 + $0x2c] ss:$16 sps:$4 sm:$0xff]   ;;  %vm4074_vm1 = vmmov 0  }
  0x8a   : > { %v3458_v13 = vld [vmem:[#allocation2 + $0x40] ss:$16 sps:$4 sm:$0xff]   ;;  %v3459_v14 = vld [vmem:[#allocation2 + $0x64] ss:$16 sps:$4 sm:$0xff]   ;;  %v3463_v15 = vld [vmem:[#allocation2 + $0x4c] ss:$16 sps:$4 sm:$0xff]  }
  0x8b   : > { %s4282_s26 = scalar_lea.vmem %s4460_s0, %s3350_s16  ;;  %1570 = vmatpush1.bf16.msra.mxu0 %v3451_v8  ;;  %v3461_v16 = vld [vmem:[#allocation2 + $0x48] ss:$16 sps:$4 sm:$0xff]   ;;  %v3464_v17 = vld [vmem:[#allocation2 + $0x60] ss:$16 sps:$4 sm:$0xff]   ;;  %v3465_v18 = vld [vmem:[#allocation2 + $0x84] ss:$16 sps:$4 sm:$0xff]  }
  0x8c   : > { %v3452_v9 = vld [vmem:[%s4282_s26 + $0x18] ss:$0 sps:$4 sm:$0xff]   ;;  %1571 = vmatprep.subr.bf16.mxu0 %v3453_v10  ;;  %v3469_v19 = vld [vmem:[#allocation2 + $0x6c] ss:$16 sps:$4 sm:$0xff]   ;;  %v3467_v20 = vld [vmem:[#allocation2 + $0x68] ss:$16 sps:$4 sm:$0xff]  }
  0x8d   : > { %3133 = vmatmul.mubr.msk.bf16.vlgmr.msra.gmra.mrb[0].mxu1 %vm1563_vm0, %v3452_v9  ;;  %v3470_v21 = vld [vmem:[#allocation2 + $0x80] ss:$16 sps:$4 sm:$0xff]   ;;  %v3471_v22 = vld [vmem:[#allocation2 + $0xa4] ss:$16 sps:$4 sm:$0xff]   ;;  %v3475_v23 = vld [vmem:[#allocation2 + $0x8c] ss:$16 sps:$4 sm:$0xff]  }
  0x8e   : > { %1732 = vmatpush1.bf16.msra.mxu1 %v3448_v6  ;;  %v3473_v24 = vld [vmem:[#allocation2 + $0x88] ss:$16 sps:$4 sm:$0xff]   ;;  %v3476_v25 = vld [vmem:[#allocation2 + $0xa0] ss:$16 sps:$4 sm:$0xff]   ;;  %v3477_v26 = vld [vmem:[#allocation2 + $0xc4] ss:$16 sps:$4 sm:$0xff]  }
  0x8f   : > { %1733 = vmatprep.subr.bf16.mxu1 %v3457_v12  ;;  %1572 = vmatpush1.bf16.msra.mxu0 %v3458_v13  ;;  %v3481_v27 = vld [vmem:[#allocation2 + $0xac] ss:$16 sps:$4 sm:$0xff]   ;;  %v3479_v28 = vld [vmem:[#allocation2 + $0xa8] ss:$16 sps:$4 sm:$0xff]   ;;  %v3482_v29 = vld [vmem:[#allocation2 + $0xc0] ss:$16 sps:$4 sm:$0xff]  }
  0x90   : > { %1573 = vmatprep.subr.bf16.mxu0 %v3459_v14  ;;  %v3483_v30 = vld [vmem:[#allocation2 + $0xe4] ss:$16 sps:$4 sm:$0xff]   ;;  %v3487_v31 = vld [vmem:[#allocation2 + $0xcc] ss:$16 sps:$4 sm:$0xff]   ;;  %v3485_v32 = vld [vmem:[#allocation2 + $0xc8] ss:$16 sps:$4 sm:$0xff]  }
  0x91   : > { %v3488_v33 = vld [vmem:[#allocation2 + $0xe0] ss:$16 sps:$4 sm:$0xff]   ;;  %v3489_v34 = vld [vmem:[#allocation2 + $0x104] ss:$16 sps:$4 sm:$0xff]   ;;  %v3493_v35 = vld [vmem:[#allocation2 + $0xec] ss:$16 sps:$4 sm:$0xff]  }
  0x92   : > { %1734 = vmatpush1.bf16.msra.mxu1 %v3455_v11  ;;  %v3491_v36 = vld [vmem:[#allocation2 + $0xe8] ss:$16 sps:$4 sm:$0xff]   ;;  %v3494_v37 = vld [vmem:[#allocation2 + $0x100] ss:$16 sps:$4 sm:$0xff]   ;;  %v3495_v38 = vld [vmem:[#allocation2 + $0x124] ss:$16 sps:$4 sm:$0xff]  }
  0x93   : > { %1735 = vmatprep.subr.bf16.mxu1 %v3463_v15  ;;  %1574 = vmatpush1.bf16.msra.mxu0 %v3464_v17  ;;  %v3499_v39 = vld [vmem:[#allocation2 + $0x10c] ss:$16 sps:$4 sm:$0xff]   ;;  %v3497_v40 = vld [vmem:[#allocation2 + $0x108] ss:$16 sps:$4 sm:$0xff]   ;;  %v3500_v41 = vld [vmem:[#allocation2 + $0x120] ss:$16 sps:$4 sm:$0xff]  }
  0x94   : > { %1575 = vmatprep.subr.bf16.mxu0 %v3465_v18  ;;  %v3501_v42 = vld [vmem:[#allocation2 + $0x144] ss:$16 sps:$4 sm:$0xff]   ;;  %v3505_v43 = vld [vmem:[#allocation2 + $0x12c] ss:$16 sps:$4 sm:$0xff]   ;;  %v3503_v44 = vld [vmem:[#allocation2 + $0x128] ss:$16 sps:$4 sm:$0xff]  }
  0x95   : > { %v3506_v45 = vld [vmem:[#allocation2 + $0x140] ss:$16 sps:$4 sm:$0xff]   ;;  %v3507_v46 = vld [vmem:[#allocation2 + $0x164] ss:$16 sps:$4 sm:$0xff]   ;;  %v3511_v47 = vld [vmem:[#allocation2 + $0x14c] ss:$16 sps:$4 sm:$0xff]  }
  0x96   : > { %1736 = vmatpush1.bf16.msra.mxu1 %v3461_v16  ;;  %v3509_v48 = vld [vmem:[#allocation2 + $0x148] ss:$16 sps:$4 sm:$0xff]   ;;  %v3512_v50 = vld [vmem:[#allocation2 + $0x160] ss:$16 sps:$4 sm:$0xff]   ;;  %v3513_v51 = vld [vmem:[#allocation2 + $0x184] ss:$16 sps:$4 sm:$0xff]  }
  0x97   : > { %1737 = vmatprep.subr.bf16.mxu1 %v3469_v19  ;;  %1576 = vmatpush1.bf16.msra.mxu0 %v3470_v21  ;;  %v337_v49 = vld [vmem:[%s4282_s26] sm:$0xff]  ;;  %v3518_v55 = vld [vmem:[#allocation2 + $0x180] ss:$16 sps:$4 sm:$0xff]   ;;  %v3519_v56 = vld [vmem:[#allocation2 + $0x1a4] ss:$16 sps:$4 sm:$0xff]   ;;  %s328_s18 = sand.u32 1, %s4052_s25  }
  0x98   : > { %1577 = vmatprep.subr.bf16.mxu0 %v3471_v22  ;;  %v2931_v52 = vcombine.high %v337_v49, %v337_v49  ;;  %v3517_v53 = vld [vmem:[#allocation2 + $0x16c] ss:$16 sps:$4 sm:$0xff]   ;;  %v3515_v54 = vld [vmem:[#allocation2 + $0x168] ss:$16 sps:$4 sm:$0xff]   ;;  %v3524_v59 = vld [vmem:[#allocation2 + $0x1a0] ss:$16 sps:$4 sm:$0xff]   ;;  %v2930_v7 = vcombine.low %v337_v49, %v337_v49 }
  0x99   : > { %v3523_v57 = vld [vmem:[#allocation2 + $0x18c] ss:$16 sps:$4 sm:$0xff]   ;;  %v3521_v58 = vld [vmem:[#allocation2 + $0x188] ss:$16 sps:$4 sm:$0xff]   ;;  %v3525_v60 = vld [vmem:[#allocation2 + $0x1c4] ss:$16 sps:$4 sm:$0xff]  }
  0x9a   : > { %1738 = vmatpush1.bf16.msra.mxu1 %v3467_v20  ;;  %1599 = vmatprep.mubr.bf16.mxu0 %v2931_v52  ;;  %v3529_v61 = vld [vmem:[#allocation2 + $0x1ac] ss:$16 sps:$4 sm:$0xff]   ;;  %v3527_v62 = vld [vmem:[#allocation2 + $0x1a8] ss:$16 sps:$4 sm:$0xff]   ;;  %v3530_v63 = vld [vmem:[#allocation2 + $0x1c0] ss:$16 sps:$4 sm:$0xff]  }
  0x9b   : > { %1739 = vmatprep.subr.bf16.mxu1 %v3475_v23  ;;  %1578 = vmatpush1.bf16.msra.mxu0 %v3476_v25  ;;  %v3531_v1 = vld [vmem:[#allocation2 + $0x1e4] ss:$16 sps:$4 sm:$0xff]   ;;  %v3535_v2 = vld [vmem:[#allocation2 + $0x1cc] ss:$16 sps:$4 sm:$0xff]   ;;  %v3533_v3 = vld [vmem:[#allocation2 + $0x1c8] ss:$16 sps:$4 sm:$0xff]  }
  0x9c   : > { %1579 = vmatprep.subr.bf16.mxu0 %v3477_v26  ;;  %1763 = vmatprep.mubr.bf16.mxu1 %v2931_v52  ;;  %v3536_v4 = vld [vmem:[#allocation2 + $0x1e0] ss:$16 sps:$4 sm:$0xff]   ;;  %v3541_v5 = vld [vmem:[#allocation2 + $0x204] ss:$16 sps:$4 sm:$0xff]   ;;  %v3544_v6 = vld [vmem:[#allocation2 + $0x1ec] ss:$16 sps:$4 sm:$0xff]  }
  0x9d   : > { %v3539_v8 = vld [vmem:[#allocation2 + $0x200] ss:$16 sps:$4 sm:$0xff]   ;;  %v3542_v9 = vld [vmem:[#allocation2 + $0x1e8] ss:$16 sps:$4 sm:$0xff]   ;;  %v3547_v10 = vld [vmem:[#allocation2 + $0x224] ss:$16 sps:$4 sm:$0xff]  }
  0x9e   : > { %1740 = vmatpush1.bf16.msra.mxu1 %v3473_v24  ;;  %v3550_v11 = vld [vmem:[#allocation2 + $0x20c] ss:$16 sps:$4 sm:$0xff]   ;;  %v3545_v12 = vld [vmem:[#allocation2 + $0x220] ss:$16 sps:$4 sm:$0xff]   ;;  %v3548_v13 = vld [vmem:[#allocation2 + $0x208] ss:$16 sps:$4 sm:$0xff]  }
  0x9f   : > { %1741 = vmatprep.subr.bf16.mxu1 %v3481_v27  ;;  %1580 = vmatpush1.bf16.msra.mxu0 %v3482_v29  ;;  %v3553_v14 = vld [vmem:[#allocation2 + $0x244] ss:$16 sps:$4 sm:$0xff]   ;;  %v3556_v15 = vld [vmem:[#allocation2 + $0x22c] ss:$16 sps:$4 sm:$0xff]   ;;  %v3551_v16 = vld [vmem:[#allocation2 + $0x240] ss:$16 sps:$4 sm:$0xff]  }
  0xa0   : > { %1581 = vmatprep.subr.bf16.mxu0 %v3483_v30  ;;  %v3554_v17 = vld [vmem:[#allocation2 + $0x228] ss:$16 sps:$4 sm:$0xff]   ;;  %v3559_v18 = vld [vmem:[#allocation2 + $0x264] ss:$16 sps:$4 sm:$0xff]   ;;  %v3562_v19 = vld [vmem:[#allocation2 + $0x24c] ss:$16 sps:$4 sm:$0xff]  }
  0xa1   : > { %v3557_v20 = vld [vmem:[#allocation2 + $0x260] ss:$16 sps:$4 sm:$0xff]   ;;  %v3560_v21 = vld [vmem:[#allocation2 + $0x248] ss:$16 sps:$4 sm:$0xff]   ;;  %v3565_v22 = vld [vmem:[#allocation2 + $0x284] ss:$16 sps:$4 sm:$0xff]  }
  0xa2   : > { %1742 = vmatpush1.bf16.msra.mxu1 %v3479_v28  ;;  %v3568_v23 = vld [vmem:[#allocation2 + $0x26c] ss:$16 sps:$4 sm:$0xff]   ;;  %v3563_v24 = vld [vmem:[#allocation2 + $0x280] ss:$16 sps:$4 sm:$0xff]   ;;  %v3566_v25 = vld [vmem:[#allocation2 + $0x268] ss:$16 sps:$4 sm:$0xff]  }
  0xa3   : > { %1743 = vmatprep.subr.bf16.mxu1 %v3487_v31  ;;  %1582 = vmatpush1.bf16.msra.mxu0 %v3488_v33  ;;  %v3571_v26 = vld [vmem:[#allocation2 + $0x2a4] ss:$16 sps:$4 sm:$0xff]   ;;  %v3574_v27 = vld [vmem:[#allocation2 + $0x28c] ss:$16 sps:$4 sm:$0xff]   ;;  %v3569_v28 = vld [vmem:[#allocation2 + $0x2a0] ss:$16 sps:$4 sm:$0xff]  }
  0xa4   : > { %1583 = vmatprep.subr.bf16.mxu0 %v3489_v34  ;;  %v3572_v29 = vld [vmem:[#allocation2 + $0x288] ss:$16 sps:$4 sm:$0xff]   ;;  %v3577_v30 = vld [vmem:[#allocation2 + $0x2c4] ss:$16 sps:$4 sm:$0xff]   ;;  %v3580_v31 = vld [vmem:[#allocation2 + $0x2ac] ss:$16 sps:$4 sm:$0xff]  }
  0xa5   : > { %v3575_v33 = vld [vmem:[#allocation2 + $0x2c0] ss:$16 sps:$4 sm:$0xff]   ;;  %v3578_v34 = vld [vmem:[#allocation2 + $0x2a8] ss:$16 sps:$4 sm:$0xff]   ;;  %v3604_v49 = vld [vmem:[#allocation2 + $0x32c] ss:$16 sps:$4 sm:$0xff]  }
  0xa6   : > { %1744 = vmatpush1.bf16.msra.mxu1 %v3485_v32  ;;  %v4288_v32 = vld [vmem:[%s4282_s26 + $0x8] sm:$0xff]  ;;  %s2928_s21 = sshll.u32 %s328_s18, 3  ;;  %s3235_s3 = sshll.u32 %s4137_s28, 7 }
  0xa7   : > { %1745 = vmatprep.subr.bf16.mxu1 %v3493_v35  ;;  %1584 = vmatpush1.bf16.msra.mxu0 %v3494_v37  ;;  %v2933_v35 = vcombine.high %v4288_v32, %v4288_v32  ;;  %v3586_v37 = vld [vmem:[#allocation2 + $0x2cc] ss:$16 sps:$4 sm:$0xff]   ;;  %v3607_v52 = vld [vmem:[#allocation2 + $0x364] ss:$16 sps:$4 sm:$0xff]   ;;  %s330_s17 = scalar_lea.vmem [#allocation10], %s2928_s21  ;;  %s4418_s10 = scalar_lea.hbm %s4467_s7, %s3235_s3 }
  0xa8   : > { %1585 = vmatprep.subr.bf16.mxu0 %v3495_v38  ;;  %v3581_v38 = vld [vmem:[#allocation2 + $0x2e0] ss:$16 sps:$4 sm:$0xff]   ;;  %s2816_s13 = sshll.u32 %s330_s17, 4  ;;  %p4488_p3 = scmp.ne.s32.totalorder %s4475_s11, 0  ;;  %s4420_s13 = int_to_ptr.vmem [resolvable:$true] %s2816_s13 }
  0xa9   : > { %s3986_s19 = scalar_lea.vmem %s4420_s13, 128  ;;  %s4075_s28 = smov [#allocation10]  }
  0xaa   : > { %1746 = vmatpush1.bf16.msra.mxu1 %v3491_v36  ;;  %v3583_v36 = vld [vmem:[#allocation2 + $0x2e4] ss:$16 sps:$4 sm:$0xff]   ;;  %p3987_p2 = scmp.ne.s32.totalorder %s4420_s13, %s3986_s19  ;;  %s3990_s20 = sshll.u32 %s4075_s28, 4  ;;  %s3991_s20 = int_to_ptr.vmem [resolvable:$false] %s3990_s20 }
  0xab   : > { %1747 = vmatprep.subr.bf16.mxu1 %v3499_v39  ;;  %1586 = vmatpush1.bf16.msra.mxu0 %v3500_v41  ;;  %v3584_v39 = vld [vmem:[#allocation2 + $0x2c8] ss:$16 sps:$4 sm:$0xff]   ;;  %v3592_v41 = vld [vmem:[#allocation2 + $0x2ec] ss:$16 sps:$4 sm:$0xff]   ;;  %s3992_s22 = scalar_lea.vmem %s3991_s20, 256  ;;  %p3993_p8 = scmp.lt.s32.totalorder %s4420_s13, %s3991_s20 }
  0xac   : > { %1587 = vmatprep.subr.bf16.mxu0 %v3501_v42  ;;  %v3587_v42 = vld [vmem:[#allocation2 + $0x300] ss:$16 sps:$4 sm:$0xff]   ;;  %p3988_p4 = pnand %p3987_p2, %p4488_p3  ;;  %p3994_p11 = scmp.lt.s32.totalorder %s3992_s22, %s3986_s19 }
  0xae   : > { %1748 = vmatpush1.bf16.msra.mxu1 %v3497_v40  ;;  %v3589_v40 = vld [vmem:[#allocation2 + $0x304] ss:$16 sps:$4 sm:$0xff]   ;;  %p3989_p7 = pneg %p3988_p4  ;;  %p3995_p13 = por %p3994_p11, %p3993_p8 }
  0xaf   : > { %1749 = vmatprep.subr.bf16.mxu1 %v3505_v43  ;;  %1588 = vmatpush1.bf16.msra.mxu0 %v3506_v45  ;;  %v3590_v43 = vld [vmem:[#allocation2 + $0x2e8] ss:$16 sps:$4 sm:$0xff]   ;;  %v3598_v45 = vld [vmem:[#allocation2 + $0x30c] ss:$16 sps:$4 sm:$0xff]  }
  0xb0   : > { %1589 = vmatprep.subr.bf16.mxu0 %v3507_v46  ;;  %v3593_v46 = vld [vmem:[#allocation2 + $0x320] ss:$16 sps:$4 sm:$0xff]   ;;  %p3996_p5 = pnand %p3995_p13, %p3989_p7 }
  0xb2   : > { %1750 = vmatpush1.bf16.msra.mxu1 %v3503_v44  ;;  %v3595_v44 = vld [vmem:[#allocation2 + $0x324] ss:$16 sps:$4 sm:$0xff]  }
  0xb3   : > { %1751 = vmatprep.subr.bf16.mxu1 %v3511_v47  ;;  %1590 = vmatpush1.bf16.msra.mxu0 %v3512_v50  ;;  %v3596_v47 = vld [vmem:[#allocation2 + $0x308] ss:$16 sps:$4 sm:$0xff]   ;;  %v3599_v50 = vld [vmem:[#allocation2 + $0x340] ss:$16 sps:$4 sm:$0xff]  }
  0xb4   : > { %1591 = vmatprep.subr.bf16.mxu0 %v3513_v51  ;;  %v3602_v51 = vld [vmem:[#allocation2 + $0x328] ss:$16 sps:$4 sm:$0xff]  }
  0xb6   : > { %1752 = vmatpush1.bf16.msra.mxu1 %v3509_v48  ;;  %v3601_v48 = vld [vmem:[#allocation2 + $0x344] ss:$16 sps:$4 sm:$0xff]  }
  0xb7   : > { %1753 = vmatprep.subr.bf16.mxu1 %v3517_v53  ;;  %1592 = vmatpush1.bf16.msra.mxu0 %v3518_v55  ;;  %v3610_v53 = vld [vmem:[#allocation2 + $0x34c] ss:$16 sps:$4 sm:$0xff]   ;;  %v3608_v55 = vld [vmem:[#allocation2 + $0x348] ss:$16 sps:$4 sm:$0xff]  }
  0xb8   : > { %1593 = vmatprep.subr.bf16.mxu0 %v3519_v56  ;;  %v3613_v56 = vld [vmem:[#allocation2 + $0x384] ss:$16 sps:$4 sm:$0xff]  }
  0xba   : > { %1754 = vmatpush1.bf16.msra.mxu1 %v3515_v54  ;;  %v3605_v54 = vld [vmem:[#allocation2 + $0x360] ss:$16 sps:$4 sm:$0xff]  }
  0xbb   : > { %1755 = vmatprep.subr.bf16.mxu1 %v3523_v57  ;;  %1594 = vmatpush1.bf16.msra.mxu0 %v3524_v59  ;;  %v3616_v57 = vld [vmem:[#allocation2 + $0x36c] ss:$16 sps:$4 sm:$0xff]   ;;  %v3614_v59 = vld [vmem:[#allocation2 + $0x368] ss:$16 sps:$4 sm:$0xff]  }
  0xbc   : > { %1595 = vmatprep.subr.bf16.mxu0 %v3525_v60  ;;  %v3619_v60 = vld [vmem:[#allocation2 + $0x3a4] ss:$16 sps:$4 sm:$0xff]  }
  0xbe   : > { %1756 = vmatpush1.bf16.msra.mxu1 %v3521_v58  ;;  %v3611_v58 = vld [vmem:[#allocation2 + $0x380] ss:$16 sps:$4 sm:$0xff]  }
  0xbf   : > { %1757 = vmatprep.subr.bf16.mxu1 %v3529_v61  ;;  %1596 = vmatpush1.bf16.msra.mxu0 %v3530_v63  ;;  %v3622_v61 = vld [vmem:[#allocation2 + $0x38c] ss:$16 sps:$4 sm:$0xff]   ;;  %v3620_v63 = vld [vmem:[#allocation2 + $0x388] ss:$16 sps:$4 sm:$0xff]  }
  0xc0   : > { %1597 = vmatprep.subr.bf16.mxu0 %v3531_v1  ;;  %v3625_v1 = vld [vmem:[#allocation2 + $0x3c4] ss:$16 sps:$4 sm:$0xff]  }
  0xc2   : > { %1758 = vmatpush1.bf16.msra.mxu1 %v3527_v62  ;;  %v3617_v62 = vld [vmem:[#allocation2 + $0x3a0] ss:$16 sps:$4 sm:$0xff]  }
  0xc3   : > { %1759 = vmatprep.subr.bf16.mxu1 %v3535_v2  ;;  %1598 = vmatpush1.bf16.msra.mxu0 %v3536_v4  ;;  %v3628_v2 = vld [vmem:[#allocation2 + $0x3ac] ss:$16 sps:$4 sm:$0xff]   ;;  %v3626_v4 = vld [vmem:[#allocation2 + $0x3a8] ss:$16 sps:$4 sm:$0xff]  }
  0xc4   : > { %1608 = vmatprep.subr.bf16.mxu0 %v3541_v5  ;;  %v3631_v5 = vld [vmem:[#allocation2 + $0x3e4] ss:$16 sps:$4 sm:$0xff]  }
  0xc6   : > { %1760 = vmatpush1.bf16.msra.mxu1 %v3533_v3  ;;  %1600 = vmatmul.mubr.bf16.vlgmr.msra.gmra.mrb[0].mxu0 %v2930_v7  ;;  %v3623_v3 = vld [vmem:[#allocation2 + $0x3c0] ss:$16 sps:$4 sm:$0xff]  }
  0xc7   : > { %1761 = vmatprep.subr.bf16.mxu1 %v3544_v6  ;;  %1609 = vmatpush1.bf16.msra.mxu0 %v3539_v8  ;;  %v3634_v6 = vld [vmem:[#allocation2 + $0x3cc] ss:$16 sps:$4 sm:$0xff]   ;;  %v3632_v8 = vld [vmem:[#allocation2 + $0x3c8] ss:$16 sps:$4 sm:$0xff]  }
  0xc8   : > { %1610 = vmatprep.subr.bf16.mxu0 %v3547_v10  ;;  %1640 = vmatprep.mubr.bf16.mxu0 %v2933_v35  ;;  %v3642_v10 = vld [vmem:[#allocation2 + $0x3ec] ss:$16 sps:$4 sm:$0xff]  }
  0xca   : > { %1762 = vmatpush1.bf16.msra.mxu1 %v3542_v9  ;;  %v3639_v9 = vld [vmem:[#allocation2 + $0x404] ss:$16 sps:$4 sm:$0xff]  }
  0xcb   : > { %1772 = vmatprep.subr.bf16.mxu1 %v3550_v11  ;;  %1611 = vmatpush1.bf16.msra.mxu0 %v3545_v12  ;;  %v2932_v11 = vcombine.low %v4288_v32, %v4288_v32  ;;  %v3637_v12 = vld [vmem:[#allocation2 + $0x400] ss:$16 sps:$4 sm:$0xff]   ;;  %v3669_v32 = vld [vmem:[#allocation2 + $0x4a4] ss:$16 sps:$4 sm:$0xff]  }
  0xcc   : > { %1612 = vmatprep.subr.bf16.mxu0 %v3553_v14  ;;  %v3645_v14 = vld [vmem:[#allocation2 + $0x424] ss:$16 sps:$4 sm:$0xff]  }
  0xcd   : > { %1764 = vmatmul.mubr.bf16.vlgmr.msra.gmra.mrb[4].mxu1 %v2930_v7  ;;  %v3629_v7 = vld [vmem:[#allocation2 + $0x3e0] ss:$16 sps:$4 sm:$0xff]  }
  0xce   : > { %1773 = vmatpush1.bf16.msra.mxu1 %v3548_v13  ;;  %1804 = vmatprep.mubr.bf16.mxu1 %v2933_v35  ;;  %v3640_v13 = vld [vmem:[#allocation2 + $0x3e8] ss:$16 sps:$4 sm:$0xff]  }
  0xcf   : > { %1774 = vmatprep.subr.bf16.mxu1 %v3556_v15  ;;  %1613 = vmatpush1.bf16.msra.mxu0 %v3551_v16  ;;  %v3648_v15 = vld [vmem:[#allocation2 + $0x40c] ss:$16 sps:$4 sm:$0xff]   ;;  %v3670_v35 = vld [vmem:[#allocation2 + $0x488] ss:$16 sps:$4 sm:$0xff]  }
  0xd0   : > { %1614 = vmatprep.subr.bf16.mxu0 %v3559_v18  ;;  %v4295_v16 = vld [vmem:[%s4282_s26 + $0x10] sm:$0xff]  ;;  %v3643_v18 = vld [vmem:[#allocation2 + $0x420] ss:$16 sps:$4 sm:$0xff]  }
  0xd2   : > { %1775 = vmatpush1.bf16.msra.mxu1 %v3554_v17  ;;  %v2935_v17 = vcombine.high %v4295_v16, %v4295_v16 }
  0xd3   : > { %1776 = vmatprep.subr.bf16.mxu1 %v3562_v19  ;;  %1615 = vmatpush1.bf16.msra.mxu0 %v3557_v20  ;;  %v3646_v19 = vld [vmem:[#allocation2 + $0x408] ss:$16 sps:$4 sm:$0xff]   ;;  %v3651_v20 = vld [vmem:[#allocation2 + $0x444] ss:$16 sps:$4 sm:$0xff]  }
  0xd4   : > { %1616 = vmatprep.subr.bf16.mxu0 %v3565_v22  ;;  %v3649_v22 = vld [vmem:[#allocation2 + $0x440] ss:$16 sps:$4 sm:$0xff]  }
  0xd6   : > { %1777 = vmatpush1.bf16.msra.mxu1 %v3560_v21  ;;  %v3654_v21 = vld [vmem:[#allocation2 + $0x42c] ss:$16 sps:$4 sm:$0xff]  }
  0xd7   : > { %1778 = vmatprep.subr.bf16.mxu1 %v3568_v23  ;;  %1617 = vmatpush1.bf16.msra.mxu0 %v3563_v24  ;;  %v3652_v23 = vld [vmem:[#allocation2 + $0x428] ss:$16 sps:$4 sm:$0xff]   ;;  %v3657_v24 = vld [vmem:[#allocation2 + $0x464] ss:$16 sps:$4 sm:$0xff]  }
  0xd8   : > { %1618 = vmatprep.subr.bf16.mxu0 %v3571_v26  ;;  %v3655_v26 = vld [vmem:[#allocation2 + $0x460] ss:$16 sps:$4 sm:$0xff]  }
  0xda   : > { %1779 = vmatpush1.bf16.msra.mxu1 %v3566_v25  ;;  %v3660_v25 = vld [vmem:[#allocation2 + $0x44c] ss:$16 sps:$4 sm:$0xff]  }
  0xdb   : > { %1780 = vmatprep.subr.bf16.mxu1 %v3574_v27  ;;  %1619 = vmatpush1.bf16.msra.mxu0 %v3569_v28  ;;  %v3658_v27 = vld [vmem:[#allocation2 + $0x448] ss:$16 sps:$4 sm:$0xff]   ;;  %v3663_v28 = vld [vmem:[#allocation2 + $0x484] ss:$16 sps:$4 sm:$0xff]  }
  0xdc   : > { %1620 = vmatprep.subr.bf16.mxu0 %v3577_v30  ;;  %v3661_v30 = vld [vmem:[#allocation2 + $0x480] ss:$16 sps:$4 sm:$0xff]  }
  0xde   : > { %1781 = vmatpush1.bf16.msra.mxu1 %v3572_v29  ;;  %v3666_v29 = vld [vmem:[#allocation2 + $0x46c] ss:$16 sps:$4 sm:$0xff]  }
  0xdf   : > { %1782 = vmatprep.subr.bf16.mxu1 %v3580_v31  ;;  %1621 = vmatpush1.bf16.msra.mxu0 %v3575_v33  ;;  %v3664_v31 = vld [vmem:[#allocation2 + $0x468] ss:$16 sps:$4 sm:$0xff]   ;;  %v3672_v33 = vld [vmem:[#allocation2 + $0x48c] ss:$16 sps:$4 sm:$0xff]  }
  0xe0   : > { %1622 = vmatprep.subr.bf16.mxu0 %v3583_v36  ;;  %v3675_v36 = vld [vmem:[#allocation2 + $0x4c4] ss:$16 sps:$4 sm:$0xff]  }
  0xe2   : > { %1783 = vmatpush1.bf16.msra.mxu1 %v3578_v34  ;;  %v3667_v34 = vld [vmem:[#allocation2 + $0x4a0] ss:$16 sps:$4 sm:$0xff]  }
  0xe3   : > { %1784 = vmatprep.subr.bf16.mxu1 %v3586_v37  ;;  %1623 = vmatpush1.bf16.msra.mxu0 %v3581_v38  ;;  %v3678_v37 = vld [vmem:[#allocation2 + $0x4ac] ss:$16 sps:$4 sm:$0xff]   ;;  %v3673_v38 = vld [vmem:[#allocation2 + $0x4c0] ss:$16 sps:$4 sm:$0xff]  }
  0xe4   : > { %1624 = vmatprep.subr.bf16.mxu0 %v3589_v40  ;;  %v3681_v40 = vld [vmem:[#allocation2 + $0x4e4] ss:$16 sps:$4 sm:$0xff]  }
  0xe6   : > { %1785 = vmatpush1.bf16.msra.mxu1 %v3584_v39  ;;  %v3676_v39 = vld [vmem:[#allocation2 + $0x4a8] ss:$16 sps:$4 sm:$0xff]  }
  0xe7   : > { %1786 = vmatprep.subr.bf16.mxu1 %v3592_v41  ;;  %1625 = vmatpush1.bf16.msra.mxu0 %v3587_v42  ;;  %v3684_v41 = vld [vmem:[#allocation2 + $0x4cc] ss:$16 sps:$4 sm:$0xff]   ;;  %v3679_v42 = vld [vmem:[#allocation2 + $0x4e0] ss:$16 sps:$4 sm:$0xff]  }
  0xe8   : > { %1626 = vmatprep.subr.bf16.mxu0 %v3595_v44  ;;  %v3687_v44 = vld [vmem:[#allocation2 + $0x504] ss:$16 sps:$4 sm:$0xff]  }
  0xea   : > { %1787 = vmatpush1.bf16.msra.mxu1 %v3590_v43  ;;  %v3682_v43 = vld [vmem:[#allocation2 + $0x4c8] ss:$16 sps:$4 sm:$0xff]  }
  0xeb   : > { %1788 = vmatprep.subr.bf16.mxu1 %v3598_v45  ;;  %1627 = vmatpush1.bf16.msra.mxu0 %v3593_v46  ;;  %v3690_v45 = vld [vmem:[#allocation2 + $0x4ec] ss:$16 sps:$4 sm:$0xff]   ;;  %v3685_v46 = vld [vmem:[#allocation2 + $0x500] ss:$16 sps:$4 sm:$0xff]  }
  0xec   : > { %1628 = vmatprep.subr.bf16.mxu0 %v3601_v48  ;;  %v3693_v48 = vld [vmem:[#allocation2 + $0x524] ss:$16 sps:$4 sm:$0xff]  }
  0xee   : > { %1789 = vmatpush1.bf16.msra.mxu1 %v3596_v47  ;;  %v3688_v47 = vld [vmem:[#allocation2 + $0x4e8] ss:$16 sps:$4 sm:$0xff]  }
  0xef   : > { %1790 = vmatprep.subr.bf16.mxu1 %v3604_v49  ;;  %1629 = vmatpush1.bf16.msra.mxu0 %v3599_v50  ;;  %v3696_v49 = vld [vmem:[#allocation2 + $0x50c] ss:$16 sps:$4 sm:$0xff]   ;;  %v3691_v50 = vld [vmem:[#allocation2 + $0x520] ss:$16 sps:$4 sm:$0xff]  }
  0xf0   : > { %1630 = vmatprep.subr.bf16.mxu0 %v3607_v52  ;;  %v3699_v52 = vld [vmem:[#allocation2 + $0x544] ss:$16 sps:$4 sm:$0xff]  }
  0xf2   : > { %1791 = vmatpush1.bf16.msra.mxu1 %v3602_v51  ;;  %v3694_v51 = vld [vmem:[#allocation2 + $0x508] ss:$16 sps:$4 sm:$0xff]  }
  0xf3   : > { %1792 = vmatprep.subr.bf16.mxu1 %v3610_v53  ;;  %1631 = vmatpush1.bf16.msra.mxu0 %v3605_v54  ;;  %v3702_v53 = vld [vmem:[#allocation2 + $0x52c] ss:$16 sps:$4 sm:$0xff]   ;;  %v3697_v54 = vld [vmem:[#allocation2 + $0x540] ss:$16 sps:$4 sm:$0xff]  }
  0xf4   : > { %1632 = vmatprep.subr.bf16.mxu0 %v3613_v56  ;;  %v3705_v56 = vld [vmem:[#allocation2 + $0x564] ss:$16 sps:$4 sm:$0xff]  }
  0xf6   : > { %1793 = vmatpush1.bf16.msra.mxu1 %v3608_v55  ;;  %v3700_v55 = vld [vmem:[#allocation2 + $0x528] ss:$16 sps:$4 sm:$0xff]  }
  0xf7   : > { %1794 = vmatprep.subr.bf16.mxu1 %v3616_v57  ;;  %1633 = vmatpush1.bf16.msra.mxu0 %v3611_v58  ;;  %v3708_v57 = vld [vmem:[#allocation2 + $0x54c] ss:$16 sps:$4 sm:$0xff]   ;;  %v3703_v58 = vld [vmem:[#allocation2 + $0x560] ss:$16 sps:$4 sm:$0xff]  }
  0xf8   : > { %1634 = vmatprep.subr.bf16.mxu0 %v3619_v60  ;;  %v3711_v60 = vld [vmem:[#allocation2 + $0x584] ss:$16 sps:$4 sm:$0xff]  }
  0xfa   : > { %1795 = vmatpush1.bf16.msra.mxu1 %v3614_v59  ;;  %v3706_v59 = vld [vmem:[#allocation2 + $0x548] ss:$16 sps:$4 sm:$0xff]  }
  0xfb   : > { %1796 = vmatprep.subr.bf16.mxu1 %v3622_v61  ;;  %1635 = vmatpush1.bf16.msra.mxu0 %v3617_v62  ;;  %v3714_v61 = vld [vmem:[#allocation2 + $0x56c] ss:$16 sps:$4 sm:$0xff]   ;;  %v3709_v62 = vld [vmem:[#allocation2 + $0x580] ss:$16 sps:$4 sm:$0xff]  }
  0xfc   : > { %1636 = vmatprep.subr.bf16.mxu0 %v3625_v1  ;;  %v3717_v1 = vld [vmem:[#allocation2 + $0x5a4] ss:$16 sps:$4 sm:$0xff]  }
  0xfe   : > { %1797 = vmatpush1.bf16.msra.mxu1 %v3620_v63  ;;  %v3712_v63 = vld [vmem:[#allocation2 + $0x568] ss:$16 sps:$4 sm:$0xff]  }
  0xff   : > { %1798 = vmatprep.subr.bf16.mxu1 %v3628_v2  ;;  %1637 = vmatpush1.bf16.msra.mxu0 %v3623_v3  ;;  %v3720_v2 = vld [vmem:[#allocation2 + $0x58c] ss:$16 sps:$4 sm:$0xff]   ;;  %v3715_v3 = vld [vmem:[#allocation2 + $0x5a0] ss:$16 sps:$4 sm:$0xff]  }
 0x100   : > { %1638 = vmatprep.subr.bf16.mxu0 %v3631_v5  ;;  %v3723_v5 = vld [vmem:[#allocation2 + $0x5c4] ss:$16 sps:$4 sm:$0xff]  }
 0x102   : > { %1799 = vmatpush1.bf16.msra.mxu1 %v3626_v4  ;;  %v3718_v4 = vld [vmem:[#allocation2 + $0x588] ss:$16 sps:$4 sm:$0xff]  }
 0x103   : > { %1800 = vmatprep.subr.bf16.mxu1 %v3634_v6  ;;  %1639 = vmatpush1.bf16.msra.mxu0 %v3629_v7  ;;  %v3726_v6 = vld [vmem:[#allocation2 + $0x5ac] ss:$16 sps:$4 sm:$0xff]   ;;  %v3721_v7 = vld [vmem:[#allocation2 + $0x5c0] ss:$16 sps:$4 sm:$0xff]  }
 0x104   : > { %1649 = vmatprep.subr.bf16.mxu0 %v3639_v9  ;;  %v3729_v9 = vld [vmem:[#allocation2 + $0x5e4] ss:$16 sps:$4 sm:$0xff]  }
 0x106   : > { %1801 = vmatpush1.bf16.msra.mxu1 %v3632_v8  ;;  %1641 = vmatmul.mubr.bf16.vlgmr.msra.gmra.mrb[0].mxu0 %v2932_v11  ;;  %v3724_v8 = vld [vmem:[#allocation2 + $0x5a8] ss:$16 sps:$4 sm:$0xff]  }
 0x107   : > { %1802 = vmatprep.subr.bf16.mxu1 %v3642_v10  ;;  %1650 = vmatpush1.bf16.msra.mxu0 %v3637_v12  ;;  %v3732_v10 = vld [vmem:[#allocation2 + $0x5cc] ss:$16 sps:$4 sm:$0xff]   ;;  %v3730_v12 = vld [vmem:[#allocation2 + $0x5c8] ss:$16 sps:$4 sm:$0xff]  }
 0x108   : > { %1651 = vmatprep.subr.bf16.mxu0 %v3645_v14  ;;  %1681 = vmatprep.mubr.bf16.mxu0 %v2935_v17  ;;  %v3743_v14 = vld [vmem:[#allocation5 + $0x4] ss:$8 sps:$4 sm:$0xff]  }
 0x10a   : > { %1803 = vmatpush1.bf16.msra.mxu1 %v3640_v13  ;;  %v3737_v13 = vld [vmem:[#allocation2 + $0x5ec] ss:$16 sps:$4 sm:$0xff]  }
 0x10b   : > { %1813 = vmatprep.subr.bf16.mxu1 %v3648_v15  ;;  %1652 = vmatpush1.bf16.msra.mxu0 %v3643_v18  ;;  %v2934_v15 = vcombine.low %v4295_v16, %v4295_v16  ;;  %v3741_v18 = vld [vmem:[#allocation5] ss:$8 sps:$4 sm:$0xff]  }
 0x10c   : > { %1653 = vmatprep.subr.bf16.mxu0 %v3651_v20  ;;  %v3746_v20 = vld [vmem:[#allocation5 + $0x14] ss:$8 sps:$4 sm:$0xff]   ;;  %v3747_v16 = vld [vmem:[#allocation5 + $0x20] ss:$8 sps:$4 sm:$0xff]  }
 0x10d   : > { %1805 = vmatmul.mubr.bf16.vlgmr.msra.gmra.mrb[4].mxu1 %v2932_v11  ;;  %v3727_v11 = vld [vmem:[#allocation2 + $0x5e0] ss:$16 sps:$4 sm:$0xff]  }
 0x10e   : > { %1814 = vmatpush1.bf16.msra.mxu1 %v3646_v19  ;;  %1845 = vmatprep.mubr.bf16.mxu1 %v2935_v17  ;;  %v3735_v17 = vld [vmem:[#allocation2 + $0x5e8] ss:$16 sps:$4 sm:$0xff]   ;;  %v3740_v19 = vld [vmem:[#allocation2 + $0x60c] ss:$16 sps:$4 sm:$0xff]  }
 0x10f   : > { %1815 = vmatprep.subr.bf16.mxu1 %v3654_v21  ;;  %1654 = vmatpush1.bf16.msra.mxu0 %v3649_v22  ;;  %v3738_v21 = vld [vmem:[#allocation2 + $0x608] ss:$16 sps:$4 sm:$0xff]  }
 0x110   : > { %1655 = vmatprep.subr.bf16.mxu0 %v3657_v24  ;;  %v3744_v22 = vld [vmem:[#allocation5 + $0x10] ss:$8 sps:$4 sm:$0xff]   ;;  %v3752_v24 = vld [vmem:[#allocation5 + $0x34] ss:$8 sps:$4 sm:$0xff]  }
 0x112   : > { %1816 = vmatpush1.bf16.msra.mxu1 %v3652_v23  ;;  %v3749_v23 = vld [vmem:[#allocation5 + $0x24] ss:$8 sps:$4 sm:$0xff]  }
 0x113   : > { %1817 = vmatprep.subr.bf16.mxu1 %v3660_v25  ;;  %1656 = vmatpush1.bf16.msra.mxu0 %v3655_v26  ;;  %v3750_v25 = vld [vmem:[#allocation5 + $0x30] ss:$8 sps:$4 sm:$0xff]   ;;  %v3755_v26 = vld [vmem:[#allocation5 + $0x44] ss:$8 sps:$4 sm:$0xff]  }
 0x114   : > { %1657 = vmatprep.subr.bf16.mxu0 %v3663_v28  ;;  %v3758_v28 = vld [vmem:[#allocation5 + $0x54] ss:$8 sps:$4 sm:$0xff]  }
 0x116   : > { %1818 = vmatpush1.bf16.msra.mxu1 %v3658_v27  ;;  %v3753_v27 = vld [vmem:[#allocation5 + $0x40] ss:$8 sps:$4 sm:$0xff]  }
 0x117   : > { %1819 = vmatprep.subr.bf16.mxu1 %v3666_v29  ;;  %1658 = vmatpush1.bf16.msra.mxu0 %v3661_v30  ;;  %v3873_v29 = vld [vmem:[%s4282_s26 + $0x18] ss:$0 sps:$4 sm:$0xff]   ;;  %v3756_v30 = vld [vmem:[#allocation5 + $0x50] ss:$8 sps:$4 sm:$0xff]   ;;  %s2803_s26 = scalar_lea.sflag [#allocation4], %s328_s18 }
 0x118   : > { %1659 = vmatprep.subr.bf16.mxu0 %v3669_v32 }
 0x11a   : > { %1820 = vmatpush1.bf16.msra.mxu1 %v3664_v31  ;;  %v3761_v31 = vld [vmem:[#allocation5 + $0x64] ss:$8 sps:$4 sm:$0xff]  }
 0x11b   : > { %1821 = vmatprep.subr.bf16.mxu1 %v3672_v33  ;;  %1660 = vmatpush1.bf16.msra.mxu0 %v3667_v34  ;;  %v3764_v33 = vld [vmem:[#allocation5 + $0x74] ss:$8 sps:$4 sm:$0xff]  }
 0x11c   : > { %1661 = vmatprep.subr.bf16.mxu0 %v3675_v36 }
 0x11e   : > { %1822 = vmatpush1.bf16.msra.mxu1 %v3670_v35 }
 0x11f   : > { %1823 = vmatprep.subr.bf16.mxu1 %v3678_v37  ;;  %1662 = vmatpush1.bf16.msra.mxu0 %v3673_v38  ;;  %v3762_v37 = vld [vmem:[#allocation5 + $0x70] ss:$8 sps:$4 sm:$0xff]   ;;  %v3767_v38 = vld [vmem:[#allocation5 + $0x84] ss:$8 sps:$4 sm:$0xff]  }
 0x120   : > { %1663 = vmatprep.subr.bf16.mxu0 %v3681_v40  ;;  %v3770_v40 = vld [vmem:[#allocation5 + $0x94] ss:$8 sps:$4 sm:$0xff]  }
 0x122   : > { %1824 = vmatpush1.bf16.msra.mxu1 %v3676_v39  ;;  %v3765_v39 = vld [vmem:[#allocation5 + $0x80] ss:$8 sps:$4 sm:$0xff]  }
 0x123   : > { %1825 = vmatprep.subr.bf16.mxu1 %v3684_v41  ;;  %1664 = vmatpush1.bf16.msra.mxu0 %v3679_v42  ;;  %v3768_v41 = vld [vmem:[#allocation5 + $0x90] ss:$8 sps:$4 sm:$0xff]   ;;  %v3773_v42 = vld [vmem:[#allocation5 + $0xa4] ss:$8 sps:$4 sm:$0xff]  }
 0x124   : > { %1665 = vmatprep.subr.bf16.mxu0 %v3687_v44  ;;  %v3776_v44 = vld [vmem:[#allocation5 + $0xb4] ss:$8 sps:$4 sm:$0xff]  }
 0x126   : > { %1826 = vmatpush1.bf16.msra.mxu1 %v3682_v43  ;;  %v3771_v43 = vld [vmem:[#allocation5 + $0xa0] ss:$8 sps:$4 sm:$0xff]  }
 0x127   : > { %1827 = vmatprep.subr.bf16.mxu1 %v3690_v45  ;;  %1666 = vmatpush1.bf16.msra.mxu0 %v3685_v46  ;;  %v3774_v45 = vld [vmem:[#allocation5 + $0xb0] ss:$8 sps:$4 sm:$0xff]   ;;  %v3779_v46 = vld [vmem:[#allocation5 + $0xc4] ss:$8 sps:$4 sm:$0xff]  }
 0x128   : > { %1667 = vmatprep.subr.bf16.mxu0 %v3693_v48  ;;  %v3782_v48 = vld [vmem:[#allocation5 + $0xd4] ss:$8 sps:$4 sm:$0xff]  }
 0x12a   : > { %1828 = vmatpush1.bf16.msra.mxu1 %v3688_v47  ;;  %v3777_v47 = vld [vmem:[#allocation5 + $0xc0] ss:$8 sps:$4 sm:$0xff]  }
 0x12b   : > { %1829 = vmatprep.subr.bf16.mxu1 %v3696_v49  ;;  %1668 = vmatpush1.bf16.msra.mxu0 %v3691_v50  ;;  %v3780_v49 = vld [vmem:[#allocation5 + $0xd0] ss:$8 sps:$4 sm:$0xff]   ;;  %v3785_v50 = vld [vmem:[#allocation5 + $0xe4] ss:$8 sps:$4 sm:$0xff]  }
 0x12c   : > { %1669 = vmatprep.subr.bf16.mxu0 %v3699_v52  ;;  %v3788_v52 = vld [vmem:[#allocation5 + $0xf4] ss:$8 sps:$4 sm:$0xff]  }
 0x12e   : > { %1830 = vmatpush1.bf16.msra.mxu1 %v3694_v51  ;;  %v3783_v51 = vld [vmem:[#allocation5 + $0xe0] ss:$8 sps:$4 sm:$0xff]  }
 0x12f   : > { %1831 = vmatprep.subr.bf16.mxu1 %v3702_v53  ;;  %1670 = vmatpush1.bf16.msra.mxu0 %v3697_v54  ;;  %v3786_v53 = vld [vmem:[#allocation5 + $0xf0] ss:$8 sps:$4 sm:$0xff]   ;;  %v3791_v54 = vld [vmem:[#allocation5 + $0x104] ss:$8 sps:$4 sm:$0xff]  }
 0x130   : > { %1671 = vmatprep.subr.bf16.mxu0 %v3705_v56  ;;  %v3838_v56 = vld [vmem:[%s4464_s4] sm:$0xff]  }
 0x132   : > { %1832 = vmatpush1.bf16.msra.mxu1 %v3700_v55  ;;  %v3837_v55 = vld [vmem:[%s4464_s4 + $0x40] sm:$0xff]  }
 0x133   : > { %1833 = vmatprep.subr.bf16.mxu1 %v3708_v57  ;;  %1672 = vmatpush1.bf16.msra.mxu0 %v3703_v58  ;;  %v3839_v57 = vld [vmem:[%s4464_s4 + $0x48] sm:$0xff]  }
 0x134   : > { %1673 = vmatprep.subr.bf16.mxu0 %v3711_v60  ;;  %v3840_v58 = vld [vmem:[%s4464_s4 + $0x8] sm:$0xff]   ;;  %v3842_v60 = vld [vmem:[%s4464_s4 + $0x10] sm:$0xff]  }
 0x136   : > { %1834 = vmatpush1.bf16.msra.mxu1 %v3706_v59  ;;  %v3841_v59 = vld [vmem:[%s4464_s4 + $0x50] sm:$0xff]  }
 0x137   : > { %1835 = vmatprep.subr.bf16.mxu1 %v3714_v61  ;;  %1674 = vmatpush1.bf16.msra.mxu0 %v3709_v62  ;;  %v3843_v61 = vld [vmem:[%s4464_s4 + $0x58] sm:$0xff]  }
 0x138   : > { %1675 = vmatprep.subr.bf16.mxu0 %v3717_v1  ;;  %v3844_v62 = vld [vmem:[%s4464_s4 + $0x18] sm:$0xff]   ;;  %v3846_v1 = vld [vmem:[%s4464_s4 + $0x20] sm:$0xff]  }
 0x13a   : > { %1836 = vmatpush1.bf16.msra.mxu1 %v3712_v63  ;;  %v3845_v63 = vld [vmem:[%s4464_s4 + $0x60] sm:$0xff]  }
 0x13b   : > { %1837 = vmatprep.subr.bf16.mxu1 %v3720_v2  ;;  %1676 = vmatpush1.bf16.msra.mxu0 %v3715_v3  ;;  %v3847_v2 = vld [vmem:[%s4464_s4 + $0x68] sm:$0xff]  }
 0x13c   : > { %1677 = vmatprep.subr.bf16.mxu0 %v3723_v5  ;;  %v3848_v3 = vld [vmem:[%s4464_s4 + $0x28] sm:$0xff]  }
 0x13e   : > { %1838 = vmatpush1.bf16.msra.mxu1 %v3718_v4  ;;  %v539_v4 = vlaneseq }
 0x13f   : > { %1839 = vmatprep.subr.bf16.mxu1 %v3726_v6  ;;  %1678 = vmatpush1.bf16.msra.mxu0 %v3721_v7  ;;  %v4351_v7 = vld [vmem:[%s4461_s1] sm:$0xf] }
 0x140   : > { %1679 = vmatprep.subr.bf16.mxu0 %v3729_v9  ;;  %v4345_v5 = vshrl.u32 %v539_v4, 7 }
 0x142   : > { %1840 = vmatpush1.bf16.msra.mxu1 %v3724_v8  ;;  %v541_v6 = vsub.s32 0, %v4345_v5  ;;  %v545_v8 = vsub.s32 1, %v4345_v5 }
 0x143   : > { %1841 = vmatprep.subr.bf16.mxu1 %v3732_v10  ;;  %1680 = vmatpush1.bf16.msra.mxu0 %v3727_v11 }
 0x144   : > { %2299 = vmatprep.subr.bf16.mxu0 %v3743_v14  ;;  %v542_v9 = vrot.slane %v4351_v7, %v541_v6  ;;  %v546_v10 = vrot.slane %v4351_v7, %v545_v8 }
 0x146   : > { %1842 = vmatpush1.bf16.msra.mxu1 %v3730_v12  ;;  %1682 = vmatmul.mubr.bf16.vlgmr.msra.gmra.mrb[0].mxu0 %v2934_v15 }
 0x147   : > { %1843 = vmatprep.subr.bf16.mxu1 %v3737_v13  ;;  %2300 = vmatpush1.bf16.msra.mxu0 %v3741_v18 }
 0x148   : > { %2301 = vmatprep.subr.bf16.mxu0 %v3746_v20 }
 0x14a   : > { %1844 = vmatpush1.bf16.msra.mxu1 %v3735_v17 }
 0x14b   : > { %1854 = vmatprep.subr.bf16.mxu1 %v3740_v19  ;;  %2302 = vmatpush1.bf16.msra.mxu0 %v3744_v22 }
 0x14c   : > { %2303 = vmatprep.subr.bf16.mxu0 %v3749_v23  ;;  %v3789_v23 = vld [vmem:[#allocation5 + $0x100] ss:$8 sps:$4 sm:$0xff]  }
 0x14d   : > { %1846 = vmatmul.mubr.bf16.vlgmr.msra.gmra.mrb[4].mxu1 %v2934_v15 }
 0x14e   : > { %1855 = vmatpush1.bf16.msra.mxu1 %v3738_v21  ;;  %1886 = vmatprep.mubr.bf16.mxu1 %v4072_v0  ;;  %v3759_v0 = vld [vmem:[#allocation5 + $0x60] ss:$8 sps:$4 sm:$0xff]  }
 0x14f   : > { %2304 = vmatpush1.bf16.msra.mxu0 %v3747_v16  ;;  %3238 = vmatprep.subr.bf16.mxu1 %v3837_v55  ;;  %v3825_v55 = vld [vmem:[#allocation5 + $0x1c0] ss:$8 sps:$4 sm:$0xff]  }
 0x150   : > { %2305 = vmatprep.subr.bf16.mxu0 %v3752_v24  ;;  %v3794_v24 = vld [vmem:[#allocation5 + $0x114] ss:$8 sps:$4 sm:$0xff]  }
 0x153   : > { %2306 = vmatpush1.bf16.msra.mxu0 %v3750_v25  ;;  %v553_v25 = vsub.s32 3, %v4345_v5 }
 0x154   : > { %2307 = vmatprep.subr.bf16.mxu0 %v3755_v26  ;;  %v3792_v26 = vld [vmem:[#allocation5 + $0x110] ss:$8 sps:$4 sm:$0xff]  }
 0x157   : > { %2308 = vmatpush1.bf16.msra.mxu0 %v3753_v27  ;;  %v3797_v27 = vld [vmem:[#allocation5 + $0x124] ss:$8 sps:$4 sm:$0xff]  }
 0x158   : > { %2309 = vmatprep.subr.bf16.mxu0 %v3758_v28  ;;  %v554_v28 = vrot.slane %v4351_v7, %v553_v25  ;;  %v3853_v25 = vld [vmem:[#allocation7] sm:$0xff]  }
 0x159   : > { %3134 = vmatmul.mubr.msk.bf16.vlgmr.msra.gmra.mrb[4].mxu1 %vm1563_vm0, %v3873_v29 }
 0x15a   : > { %3239 = vmatpush3.bf16.msra.mxu1 %v3838_v56  ;;  %v549_v56 = vsub.s32 2, %v4345_v5  ;;  %v3855_v5 = vld [vmem:[#allocation7 + $0x10] sm:$0xff]  }
 0x15b   : > { %2310 = vmatpush1.bf16.msra.mxu0 %v3756_v30  ;;  %3240 = vmatprep.subr.bf16.mxu1 %v3839_v57  ;;  %v3795_v30 = vld [vmem:[#allocation5 + $0x120] ss:$8 sps:$4 sm:$0xff]   ;;  %v3830_v57 = vld [vmem:[#allocation5 + $0x1d4] ss:$8 sps:$4 sm:$0xff]  }
 0x15c   : > { %2311 = vmatprep.subr.bf16.mxu0 %v3761_v31 }
 0x15e   : > { %3241 = vmatpush3.bf16.msra.mxu1 %v3840_v58  ;;  %v3828_v58 = vld [vmem:[#allocation5 + $0x1d0] ss:$8 sps:$4 sm:$0xff]  }
 0x15f   : > { %2312 = vmatpush1.bf16.msra.mxu0 %v3759_v0  ;;  %3242 = vmatprep.subr.bf16.mxu1 %v3841_v59  ;;  %v3800_v0 = vld [vmem:[#allocation5 + $0x134] ss:$8 sps:$4 sm:$0xff]   ;;  %v550_v59 = vrot.slane %v4351_v7, %v549_v56  ;;  %v2788_v56 = vand.u32 127, %v539_v4 }
 0x160   : > { %v4304_v32 = vpop.f32.mrb[0].mxu1  ;;  %2313 = vmatprep.subr.bf16.mxu0 %v3764_v33  ;;  %v3850_v7 = vld [vmem:[%s4464_s4 + $0x30] sm:$0xff]  }
 0x161   : > { %v4306_v34 = vpop.f32.mrb[1].mxu1  ;;  %vm2789_vm2 = vcmp.lt.s32.totalorder %v2788_v56, 10 }
 0x162   : > { %v1728_v35 = vpop.f32.mrb[2].mxu1  ;;  %3243 = vmatpush3.bf16.msra.mxu1 %v3842_v60  ;;  %v3833_v60 = vld [vmem:[#allocation5 + $0x1e4] ss:$8 sps:$4 sm:$0xff]  }
 0x163   : > { %v1729_v36 = vpop.f32.mrb[3].mxu1  ;;  %2314 = vmatpush1.bf16.msra.mxu0 %v3762_v37  ;;  %3244 = vmatprep.subr.bf16.mxu1 %v3843_v61  ;;  %v3803_v37 = vld [vmem:[#allocation5 + $0x144] ss:$8 sps:$4 sm:$0xff]   ;;  %v3831_v61 = vld [vmem:[#allocation5 + $0x1e0] ss:$8 sps:$4 sm:$0xff]  }
 0x164   : > { %2315 = vmatprep.subr.bf16.mxu0 %v3767_v38  ;;  %v3798_v36 = vld [vmem:[#allocation5 + $0x130] ss:$8 sps:$4 sm:$0xff]  }
 0x166   : > { %3245 = vmatpush3.bf16.msra.mxu1 %v3844_v62 }
 0x167   : > { %2316 = vmatpush1.bf16.msra.mxu0 %v3765_v39  ;;  %3246 = vmatprep.subr.bf16.mxu1 %v3845_v63  ;;  %v3801_v39 = vld [vmem:[#allocation5 + $0x140] ss:$8 sps:$4 sm:$0xff]   ;;  %v3836_v63 = vld [vmem:[#allocation5 + $0x1f4] ss:$8 sps:$4 sm:$0xff]  }
 0x168   : > { %2317 = vmatprep.subr.bf16.mxu0 %v3770_v40  ;;  %v3806_v40 = vld [vmem:[#allocation5 + $0x154] ss:$8 sps:$4 sm:$0xff]  }
 0x16a   : > { %3247 = vmatpush3.bf16.msra.mxu1 %v3846_v1  ;;  %v3834_v1 = vld [vmem:[#allocation5 + $0x1f0] ss:$8 sps:$4 sm:$0xff]  }
 0x16b   : > { %2318 = vmatpush1.bf16.msra.mxu0 %v3768_v41  ;;  %3248 = vmatprep.subr.bf16.mxu1 %v3847_v2  ;;  %v3804_v41 = vld [vmem:[#allocation5 + $0x150] ss:$8 sps:$4 sm:$0xff]  }
 0x16c   : > { %2319 = vmatprep.subr.bf16.mxu0 %v3773_v42  ;;  %v3809_v42 = vld [vmem:[#allocation5 + $0x164] ss:$8 sps:$4 sm:$0xff]  }
 0x16e   : > { %3249 = vmatpush3.bf16.msra.mxu1 %v3848_v3 }
 0x16f   : > { %2320 = vmatpush1.bf16.msra.mxu0 %v3771_v43  ;;  %v3807_v43 = vld [vmem:[#allocation5 + $0x160] ss:$8 sps:$4 sm:$0xff]  }
 0x170   : > { %2321 = vmatprep.subr.bf16.mxu0 %v3776_v44  ;;  %v3812_v44 = vld [vmem:[#allocation5 + $0x174] ss:$8 sps:$4 sm:$0xff]  }
 0x173   : > { %2322 = vmatpush1.bf16.msra.mxu0 %v3774_v45  ;;  %v3810_v45 = vld [vmem:[#allocation5 + $0x170] ss:$8 sps:$4 sm:$0xff]  }
 0x174   : > { %2323 = vmatprep.subr.bf16.mxu0 %v3779_v46  ;;  %v3815_v46 = vld [vmem:[#allocation5 + $0x184] ss:$8 sps:$4 sm:$0xff]  }
 0x177   : > { %2324 = vmatpush1.bf16.msra.mxu0 %v3777_v47  ;;  %v3813_v47 = vld [vmem:[#allocation5 + $0x180] ss:$8 sps:$4 sm:$0xff]  }
 0x178   : > { %2325 = vmatprep.subr.bf16.mxu0 %v3782_v48  ;;  %v3818_v48 = vld [vmem:[#allocation5 + $0x194] ss:$8 sps:$4 sm:$0xff]  }
 0x17b   : > { %2326 = vmatpush1.bf16.msra.mxu0 %v3780_v49  ;;  %v3816_v49 = vld [vmem:[#allocation5 + $0x190] ss:$8 sps:$4 sm:$0xff]  }
 0x17c   : > { %2327 = vmatprep.subr.bf16.mxu0 %v3785_v50  ;;  %v3821_v50 = vld [vmem:[#allocation5 + $0x1a4] ss:$8 sps:$4 sm:$0xff]  }
 0x17f   : > { %2328 = vmatpush1.bf16.msra.mxu0 %v3783_v51  ;;  %v3819_v51 = vld [vmem:[#allocation5 + $0x1a0] ss:$8 sps:$4 sm:$0xff]  }
 0x180   : > { %2329 = vmatprep.subr.bf16.mxu0 %v3788_v52  ;;  %v3824_v52 = vld [vmem:[#allocation5 + $0x1b4] ss:$8 sps:$4 sm:$0xff]  }
 0x183   : > { %2330 = vmatpush1.bf16.msra.mxu0 %v3786_v53  ;;  %v3822_v53 = vld [vmem:[#allocation5 + $0x1b0] ss:$8 sps:$4 sm:$0xff]  }
 0x184   : > { %2340 = vmatprep.subr.bf16.mxu0 %v3791_v54  ;;  %v3827_v54 = vld [vmem:[#allocation5 + $0x1c4] ss:$8 sps:$4 sm:$0xff]  }
 0x219   : > { %v1683_v11 = vpop.f32.mrb[0].mxu0 }
 0x21a   : > { %v3318_v12 = vadd.f32 %v1683_v11, %v542_v9  ;;  %v1685_v13 = vpop.f32.mrb[1].mxu0  ;;  %v3849_v9 = vld [vmem:[%s4464_s4 + $0x70] sm:$0xff]   ;;  %v3852_v11 = vld [vmem:[%s4464_s4 + $0x38] sm:$0xff]  }
 0x21b   : > { %v3320_v14 = vadd.f32 %v1685_v13, %v546_v10  ;;  %v1687_v15 = vpop.f32.mrb[2].mxu0  ;;  %3250 = vmatprep.subr.bf16.mxu1 %v3849_v9  ;;  %v3851_v10 = vld [vmem:[%s4464_s4 + $0x78] sm:$0xff]   ;;  %v1903_v13 = vld [vmem:[%s4461_s1 + $0x4] sm:$0x3] }
 0x21c   : > { %v3319_v17 = vadd.f32 %v3318_v12, %v4304_v32  ;;  %v1688_v18 = vpop.f32.mrb[3].mxu0  ;;  %3251 = vmatpush3.bf16.msra.mxu1 %v3850_v7  ;;  %v4073_v12 = vmov 0.0   ;;  %v1976_v15 = vrot.slane %v1903_v13, %v545_v8  ;;  %v3857_v8 = vld [vmem:[#allocation7 + $0x20] sm:$0xff]  }
 0x21d   : > { %v3321_v19 = vadd.f32 %v3320_v14, %v4306_v34  ;;  %3252 = vmatprep.subr.bf16.mxu1 %v3851_v10  ;;  %v1972_v14 = vrot.slane %v1903_v13, %v541_v6  ;;  %v3856_v6 = vld [vmem:[#allocation7 + $0x18] sm:$0xff]  }
 0x21e   : > { %v1895_v20 = vmax.f32 %v3319_v17, 0.0 }
 0x21f   : > { %v1896_v21 = vmax.f32 %v3321_v19, 0.0 }
 0x220   : > { %v1899_v16 = vpack.c.bf16 %v1895_v20, %v1895_v20  ;;  %3253 = vmatpush3.bf16.msra.mxu1 %v3852_v11 }
 0x221   : > { %v1900_v22 = vpack.c.bf16 %v1896_v21, %v1896_v21  ;;  %3278 = vmatprep.subr.bf16.mxu1 %v4073_v12 }
 0x223   : > { %2331 = vmatprep.mubr.bf16.mxu0 %v1900_v22 }
 0x224   : > { %2332 = vmatmul.mubr.bf16.vlgmr.msra.gmra.mrb[4].mxu0 %v1899_v16 }
 0x225   : > { %2341 = vmatpush1.bf16.msra.mxu0 %v3789_v23 }
 0x226   : > { %2342 = vmatprep.subr.bf16.mxu0 %v3794_v24 }
 0x229   : > { %2343 = vmatpush1.bf16.msra.mxu0 %v3792_v26 }
 0x22a   : > { %2344 = vmatprep.subr.bf16.mxu0 %v3797_v27  ;;  %v3854_v27 = vld [vmem:[#allocation7 + $0x8] sm:$0xff]  }
 0x22c   : > { %v1888_v29 = vpop.f32.mrb[4].mxu1 }
 0x22d   : > { %v1890_v31 = vpop.f32.mrb[5].mxu1  ;;  %2345 = vmatpush1.bf16.msra.mxu0 %v3795_v30  ;;  %v3322_v62 = vadd.f32 %v1888_v29, %v550_v59  ;;  %v3859_v29 = vld [vmem:[#allocation7 + $0x30] sm:$0xff]   ;;  %v3860_v30 = vld [vmem:[#allocation7 + $0x38] sm:$0xff]  }
 0x22e   : > { %v3323_v32 = vadd.f32 %v1890_v31, %v554_v28  ;;  %v1892_v33 = vpop.f32.mrb[6].mxu1  ;;  %2346 = vmatprep.subr.bf16.mxu0 %v3800_v0  ;;  %v3858_v28 = vld [vmem:[#allocation7 + $0x28] sm:$0xff]  }
 0x22f   : > { %v1893_v34 = vpop.f32.mrb[7].mxu1  ;;  %v1897_v2 = vmax.f32 %v3322_v62, 0.0  ;;  %v3199_v0 = vld [vmem:[%s4461_s1 + $0x6] ss:$0 sm:$0xff] }
 0x230   : > { %v1898_v35 = vmax.f32 %v3323_v32, 0.0 }
 0x231   : > { %2347 = vmatpush1.bf16.msra.mxu0 %v3798_v36  ;;  %v1901_v3 = vpack.c.bf16 %v1897_v2, %v1897_v2 }
 0x232   : > { %v1902_v38 = vpack.c.bf16 %v1898_v35, %v1898_v35  ;;  %2348 = vmatprep.subr.bf16.mxu0 %v3803_v37 }
 0x234   : > { %2372 = vmatprep.mubr.bf16.mxu0 %v1902_v38  ;;  %v3861_v38 = vld [vmem:[#allocation8] sm:$0xff]  }
 0x235   : > { %2349 = vmatpush1.bf16.msra.mxu0 %v3801_v39 }
 0x236   : > { %2350 = vmatprep.subr.bf16.mxu0 %v3806_v40  ;;  %v3862_v40 = vld [vmem:[#allocation8 + $0x8] sm:$0xff]  }
 0x239   : > { %2351 = vmatpush1.bf16.msra.mxu0 %v3804_v41  ;;  %v3863_v41 = vld [vmem:[#allocation8 + $0x10] sm:$0xff]  }
 0x23a   : > { %2352 = vmatprep.subr.bf16.mxu0 %v3809_v42  ;;  %v3864_v42 = vld [vmem:[#allocation8 + $0x18] sm:$0xff]  }
 0x23d   : > { %2353 = vmatpush1.bf16.msra.mxu0 %v3807_v43  ;;  %v3865_v43 = vld [vmem:[#allocation8 + $0x20] sm:$0xff]  }
 0x23e   : > { %2354 = vmatprep.subr.bf16.mxu0 %v3812_v44  ;;  %v3866_v44 = vld [vmem:[#allocation8 + $0x28] sm:$0xff]  }
 0x241   : > { %2355 = vmatpush1.bf16.msra.mxu0 %v3810_v45  ;;  %v3867_v45 = vld [vmem:[#allocation8 + $0x30] sm:$0xff]  }
 0x242   : > { %2356 = vmatprep.subr.bf16.mxu0 %v3815_v46  ;;  %v3868_v46 = vld [vmem:[#allocation8 + $0x38] sm:$0xff]  }
 0x245   : > { %2357 = vmatpush1.bf16.msra.mxu0 %v3813_v47  ;;  %v3216_v47 = vld [vmem:[%s4461_s1 + $0x7] ss:$0 sm:$0xff] }
 0x246   : > { %2358 = vmatprep.subr.bf16.mxu0 %v3818_v48 }
 0x249   : > { %2359 = vmatpush1.bf16.msra.mxu0 %v3816_v49 }
 0x24a   : > { %2360 = vmatprep.subr.bf16.mxu0 %v3821_v50 }
 0x24d   : > { %2361 = vmatpush1.bf16.msra.mxu0 %v3819_v51 }
 0x24e   : > { %2362 = vmatprep.subr.bf16.mxu0 %v3824_v52 }
 0x251   : > { %2363 = vmatpush1.bf16.msra.mxu0 %v3822_v53 }
 0x252   : > { %2364 = vmatprep.subr.bf16.mxu0 %v3827_v54 }
 0x255   : > { %2365 = vmatpush1.bf16.msra.mxu0 %v3825_v55  ;;  %v3225_v55 = vld [vmem:[%s4461_s1 + $0x8] ss:$0 sm:$0xff] }
 0x256   : > { %2366 = vmatprep.subr.bf16.mxu0 %v3830_v57 }
 0x259   : > { %2367 = vmatpush1.bf16.msra.mxu0 %v3828_v58 }
 0x25a   : > { %2368 = vmatprep.subr.bf16.mxu0 %v3833_v60 }
 0x25d   : > { %2369 = vmatpush1.bf16.msra.mxu0 %v3831_v61 }
 0x25e   : > { %2370 = vmatprep.subr.bf16.mxu0 %v3836_v63 }
 0x261   : > { %2371 = vmatpush1.bf16.msra.mxu0 %v3834_v1 }
 0x264   : > { %2373 = vmatmul.mubr.bf16.vlgmr.msra.gmra.mrb[4].mxu0 %v1901_v3 }
 0x337   : > { %v2374_v17 = vpop.f32.mrb[4].mxu0 }
 0x338   : > { %v3324_v18 = vadd.f32 %v2374_v17, %v1972_v14  ;;  %v2376_v19 = vpop.f32.mrb[5].mxu0 }
 0x339   : > { %v3325_v20 = vadd.f32 %v2376_v19, %v1976_v15  ;;  %v2378_v21 = vpop.f32.mrb[6].mxu0 }
 0x33a   : > { %v2381_v22 = vmax.f32 %v3324_v18, 0.0  ;;  %v2379_v23 = vpop.f32.mrb[7].mxu0 }
 0x33b   : > { %v2382_v16 = vmax.f32 %v3325_v20, 0.0 }
 0x33c   : > { %v2383_v26 = vpack.c.bf16 %v2381_v22, %v2381_v22 }
 0x33d   : > { %v2384_v24 = vpack.c.bf16 %v2382_v16, %v2382_v16 }
 0x33f   : > { %2552 = vmatprep.mubr.bf16.mxu1 %v2384_v24 }
 0x340   : > { %2553 = vmatmul.mubr.bf16.vlgmr.msra.gmra.mrb[8].mxu1 %v2383_v26 }
 0x341   : > { %3279 = vmatpush3.bf16.msra.mxu1 %v3853_v25  ;;  %3294 = vmatprep.mubr.msk.bf16.mxu1 %vm4074_vm1, %v4073_v12 }
 0x342   : > { %3280 = vmatprep.subr.bf16.mxu1 %v4073_v12 }
 0x345   : > { %3281 = vmatpush3.bf16.msra.mxu1 %v3854_v27 }
 0x346   : > { %3282 = vmatprep.subr.bf16.mxu1 %v4073_v12 }
 0x349   : > { %3283 = vmatpush3.bf16.msra.mxu1 %v3855_v5 }
 0x34a   : > { %3284 = vmatprep.subr.bf16.mxu1 %v4073_v12 }
 0x34d   : > { %3285 = vmatpush3.bf16.msra.mxu1 %v3856_v6 }
 0x34e   : > { %3286 = vmatprep.subr.bf16.mxu1 %v4073_v12 }
 0x351   : > { %3287 = vmatpush3.bf16.msra.mxu1 %v3857_v8 }
 0x352   : > { %3288 = vmatprep.subr.bf16.mxu1 %v4073_v12 }
 0x355   : > { %3289 = vmatpush3.bf16.msra.mxu1 %v3858_v28 }
 0x356   : > { %3290 = vmatprep.subr.bf16.mxu1 %v4073_v12 }
 0x359   : > { %3291 = vmatpush3.bf16.msra.mxu1 %v3859_v29 }
 0x35a   : > { %3292 = vmatprep.subr.bf16.mxu1 %v4073_v12 }
 0x35d   : > { %3293 = vmatpush3.bf16.msra.mxu1 %v3860_v30 }
 0x35e   : > { %3298 = vmatprep.subr.bf16.mxu1 %v4073_v12 }
 0x413   : > { %v3254_v31 = vpop.f32.mrb[8].mxu1 }
 0x414   : > { %v3255_v32 = vpop.f32.mrb[9].mxu1 }
 0x415   : > { %v3256_v33 = vadd.f32 %v3255_v32, %v3254_v31  ;;  %v3257_v34 = vpop.f32.mrb[10].mxu1 }
 0x416   : > { %v3258_v35 = vpop.f32.mrb[11].mxu1 }
 0x417   : > { %v2555_v36 = vadd.f32 %v3256_v33, %v3199_v0 }
 0x419   : > { %v2560_v37 = vmax.f32 %v2555_v36, 0.0 }
 0x41b   : > { %v2561_v39 = vpack.c.bf16 %v2560_v37, %v2560_v37 }
 0x41d   : > { %3295 = vmatmul.mubr.bf16.vlgmr.msra.gmra.mrb[12].mxu1 %v2561_v39 }
 0x41e   : > { %3299 = vmatpush3.bf16.msra.mxu1 %v3861_v38  ;;  %3314 = vmatprep.mubr.msk.bf16.mxu1 %vm4074_vm1, %v4073_v12 }
 0x41f   : > { %3300 = vmatprep.subr.bf16.mxu1 %v4073_v12 }
 0x422   : > { %3301 = vmatpush3.bf16.msra.mxu1 %v3862_v40 }
 0x423   : > { %3302 = vmatprep.subr.bf16.mxu1 %v4073_v12 }
 0x426   : > { %3303 = vmatpush3.bf16.msra.mxu1 %v3863_v41 }
 0x427   : > { %3304 = vmatprep.subr.bf16.mxu1 %v4073_v12 }
 0x42a   : > { %3305 = vmatpush3.bf16.msra.mxu1 %v3864_v42 }
 0x42b   : > { %3306 = vmatprep.subr.bf16.mxu1 %v4073_v12 }
 0x42e   : > { %3307 = vmatpush3.bf16.msra.mxu1 %v3865_v43 }
 0x42f   : > { %3308 = vmatprep.subr.bf16.mxu1 %v4073_v12 }
 0x432   : > { %3309 = vmatpush3.bf16.msra.mxu1 %v3866_v44 }
 0x433   : > { %3310 = vmatprep.subr.bf16.mxu1 %v4073_v12 }
 0x436   : > { %3311 = vmatpush3.bf16.msra.mxu1 %v3867_v45 }
 0x437   : > { %3312 = vmatprep.subr.bf16.mxu1 %v4073_v12 }
 0x43a   : > { %3313 = vmatpush3.bf16.msra.mxu1 %v3868_v46 }
 0x4f0   : > { %v2667_v48 = vpop.f32.mrb[12].mxu1 }
 0x4f1   : > { %v2668_v49 = vadd.f32 %v3216_v47, %v2667_v48  ;;  %v3296_v50 = vpop.f32.mrb[13].mxu1 }
 0x4f2   : > { %v2670_v51 = vpop.f32.mrb[14].mxu1 }
 0x4f3   : > { %v2673_v52 = vmax.f32 %v2668_v49, 0.0  ;;  %v3297_v53 = vpop.f32.mrb[15].mxu1 }
 0x4f5   : > { %v2674_v54 = vpack.c.bf16 %v2673_v52, %v2673_v52 }
 0x4f7   : > { %3315 = vmatmul.mubr.bf16.vlgmr.msra.gmra.mrb[16].mxu1 %v2674_v54 }
 0x5ca   : > { %v2780_v57 = vpop.f32.mrb[16].mxu1 }
 0x5cb   : > { %v2781_v58 = vadd.f32 %v3225_v55, %v2780_v57  ;;  %v3316_v59 = vpop.f32.mrb[17].mxu1 }
 0x5cc   : > { %v2783_v60 = vpop.f32.mrb[18].mxu1 }
 0x5cd   : > { %v2786_v61 = vmax.f32 %v2781_v58, 0.0  ;;  %v3317_v62 = vpop.f32.mrb[19].mxu1 }
 0x5cf   : > { %v2790_v63 = vsel %vm2789_vm2, %v2786_v61, -1e+30 }
 0x5d0   : > { %2791 = vmax.xlane.f32.xlu0 %v2790_v63 }
 0x65d   : > { %v2792_v1 = vpop.xlane.xlu0 %2791 }
 0x65e   : > { %v2793_v2 = vsub.f32 %v2790_v63, %v2792_v1 }
 0x660   : > { %v2794_v3 = vmul.f32 1.442695, %v2793_v2 }
 0x662   : > { %3869 = vpow2.f32 %v2794_v3 }
 0x66c   : > { %v3870_v9 = vpop.eup %3869 }
 0x66d   : > { %2796 = vadd.xlane.f32.xlu0 %v3870_v9 }
 0x6fa   : > { %v2797_v7 = vpop.xlane.xlu0 %2796 }
 0x6fb   : > { %3871 = vlog2.f32 %v2797_v7 }
 0x705   : > { %v3872_v4 = vpop.eup %3871 }
 0x706   : > { %v2799_v10 = vmul.f32 0.6931472, %v3872_v4 }
 0x708   : > { %v2800_v11 = vsub.f32 %v2793_v2, %v2799_v10 }
 0x70a   : > { %2801 = vst [vmem:[%s330_s17] sm:$0xff] %v2800_v11 }
 0x70b   : > { %3999 = shalt.err (!%p3996_p5)
}
 0x70c   : > { %s4000_s23 = scalar_lea.hbm %s4418_s10, 128  ;;  %s4004_s14 = scalar_lea.hbm %s4467_s7, 256 }
 0x70d   : > { %p4001_p0 = scmp.ne.s32.totalorder %s4418_s10, %s4000_s23  ;;  %p4005_p10 = scmp.lt.u32.totalorder %s4418_s10, %s4467_s7 }
 0x70e   : > { %p4006_p12 = scmp.lt.u32.totalorder %s4004_s14, %s4000_s23  ;;  %p4008_p2 = scmp.lt.u32.totalorder %s4000_s23, %s4418_s10 }
 0x70f   : > { %p4002_p6 = pnand %p4001_p0, %p4488_p3 }
 0x710   : > { %p4007_p1 = por %p4006_p12, %p4005_p10 }
 0x711   : > { %p4003_p9 = pneg %p4002_p6 }
 0x712   : > { %p4009_p4 = por %p4008_p2, %p4007_p1 }
 0x714   : > { %p4010_p7 = pnand %p4009_p4, %p4003_p9 }
 0x716   : > { %4013 = shalt.err (!%p4010_p7)
}
 0x717   : > { %3367 = dma.vmem_to_hbm [thread:$0]  (%p4488_p3), %s4420_s13, 128, %s4418_s10, %s2803_s26  }
 0x718 PF: > { %p3394_p8 = scmp.ge.s32.totalorder %s4060_s27, 2  ;;  %s2828_s21 = sand.u32 1, %s4048_s24  }
 0x719   : > { %p4489_p11 = scmp.ne.s32.totalorder %s4476_s12, 0  ;;  %s2829_s3 = scalar_lea.sflag [#allocation4], %s2828_s21 }
 0x71b   : > { %p3383_p13 = pnand %p3394_p8, %p4489_p11 }
 0x71d   : > { %4043 = dma.done.wait (!%p3383_p13), %s2829_s3, 128  }
 0x71e   : > { %4045 = vsyncadd (!%p3383_p13), %s2829_s3, 4294967168  ;;  %s4490_s17 = sld [smem:[#allocation15_spill]]  ;;  %s4491_s26 = sld [smem:[#allocation16_spill]] }
 0x71f   : > { %p20_p5 = scmp.ge.s32.totalorder %s4141_s30, 4   ;;  %s4492_s24 = smov %s4052_s25 }
 0x720   : > { %s4494_s27 = smov %s4141_s30 }
 0x721   :  { %22 = sbr.rel (!%p20_p5) target bundleno = 8 (0x8), region = 100 }
 0x724   : > { %s4493_s25 = smov %s4490_s17 }
 0x728   :  { %2834 = vsyncpa [#allocation3], 1 }
 0x729   :  { %2836 = vsyncpa [#allocation3 + $0x1], 1 }
 0x72a   :  { %2837 = vsyncpa [#allocation6], 1 }
 0x72b   :  { %2838 = vsyncpa [#allocation9], 1 }
 0x72c   :  { %2839 = vsyncpa [#allocation4], 1 }
 0x72d   :  { %2841 = vsyncpa [#allocation4 + $0x1], 1 }

</bundles_post_ra>
